<compile_context>
chip_gen: v7x
topology: tpu7x:2x2x1
jax: 0.10.0
libtpu: 0.0.40
codegen_flags: <defaults>
</compile_context>

<pallas_src>
import functools
import numpy as np
import jax
import jax.numpy as jnp
from jax import lax
from jax.experimental import pallas as pl
from jax.experimental.pallas import tpu as pltpu


# ----------------------------------------------------------------------------
# In-kernel helpers
# ----------------------------------------------------------------------------
def _layer_norm(x, w, b, eps=1e-5):
    mu = jnp.mean(x, axis=-1, keepdims=True)
    xc = x - mu
    var = jnp.mean(xc * xc, axis=-1, keepdims=True)
    return xc * lax.rsqrt(var + eps) * w + b


# ----------------------------------------------------------------------------
# Fused encoder-stack kernel
#   grid = (batch_block, layer); activation (Bb*S, D) lives in VMEM scratch
#   vec rows: 0 bo, 1 ln1w, 2 ln1b, 3 ln2w, 4 ln2b, 5 b2
# ----------------------------------------------------------------------------
def encoder_stack_kernel(h0_ref, wqkv_ref, bqkv_ref, wo_ref, w1_ref, b1_ref,
                         w2_ref, vec_ref, out_ref, h_ref, *, nhead, seq_len):
    l = pl.program_id(1)
    num_layers = pl.num_programs(1)
    M, D = h_ref.shape                      # M = Bb * S
    S = seq_len
    Bb = M // S
    H = nhead
    dh = D // H
    G = H * Bb                              # fused (head, sequence) batch dim

    # --- first layer of this batch block: load the (already projected) input -
    @pl.when(l == 0)
    def _():
        h_ref[...] = h0_ref[...]

    h = h_ref[...]                          # (M, D) f32
    vec = vec_ref[0]                        # (6, D) f32

    # --- QKV projection: one full-width (M,D)x(D,3D) MXU matmul ---------------
    # 1/sqrt(dh) already folded into the Wq / bq columns host-side.
    qkv = jnp.dot(h.astype(jnp.bfloat16), wqkv_ref[0],
                  preferred_element_type=jnp.float32) + bqkv_ref[0]   # (M, 3D)
    qkv = qkv.astype(jnp.bfloat16)

    def split_heads(base):
        # (M, D)-range of qkv -> (H, M, dh) -> (H*Bb, S, dh)
        xh = jnp.concatenate(
            [qkv[None, :, base + i * dh: base + (i + 1) * dh] for i in range(H)],
            axis=0)
        return xh.reshape(G, S, dh)

    q = split_heads(0)
    k = split_heads(D)
    v = split_heads(2 * D)

    # --- attention: two batched einsums over the fused (head, seq) batch ------
    s = jnp.einsum('gqd,gkd->gqk', q, k,
                   preferred_element_type=jnp.float32)                # (G, S, S)
    s = s - jnp.max(s, axis=-1, keepdims=True)
    p = jnp.exp(s)
    # approx reciprocal: EUP slot (essentially free); ~1e-3 rel-err vs exact div.
    p = p * pl.reciprocal(jnp.sum(p, axis=-1, keepdims=True), approx=True)
    ctx = jnp.einsum('gqk,gkd->gqd', p.astype(jnp.bfloat16), v,
                     preferred_element_type=jnp.float32)              # (G, S, dh)

    # re-pack heads along lanes (bf16 to halve copy traffic), one out-proj matmul
    ctx = ctx.astype(jnp.bfloat16).reshape(H, M, dh)
    attn_in = jnp.concatenate([ctx[i] for i in range(H)], axis=-1)    # (M, D)
    attn = jnp.dot(attn_in, wo_ref[0],
                   preferred_element_type=jnp.float32) + vec[0:1, :]

    # --- residual + LayerNorm 1 (post-LN, f32) --------------------------------
    x1 = _layer_norm(h + attn, vec[1:2, :], vec[2:3, :])

    # --- feed-forward: Linear -> ReLU -> Linear --------------------------------
    hmid = jnp.dot(x1.astype(jnp.bfloat16), w1_ref[0],
                   preferred_element_type=jnp.float32) + b1_ref[0]
    hmid = jnp.maximum(hmid, 0.0)
    ff = jnp.dot(hmid.astype(jnp.bfloat16), w2_ref[0],
                 preferred_element_type=jnp.float32) + vec[5:6, :]

    # --- residual + LayerNorm 2; keep activation resident in VMEM -------------
    h_new = _layer_norm(x1 + ff, vec[3:4, :], vec[4:5, :])
    h_ref[...] = h_new

    # --- last layer: emit the lane-dense last-timestep hidden (Bb, D) ---------
    @pl.when(l == num_layers - 1)
    def _():
        out_ref[...] = jnp.concatenate(
            [h_new[(b + 1) * S - 1:(b + 1) * S, :] for b in range(Bb)], axis=0)


# ----------------------------------------------------------------------------
# Wrapper
# ----------------------------------------------------------------------------
def _pick_batch_block(B, S, target_rows=256):
    """Largest divisor of B such that Bb*S ~<= target_rows (fills MXU M-dim)."""
    bb_max = max(1, target_rows // max(S, 1))
    for bb in range(min(B, bb_max), 0, -1):
        if B % bb == 0:
            return bb
    return 1


def transformer_forward(params, x, nhead):
    B, S, In = x.shape
    D = params["w_in"].shape[1]
    L = params["wqkv"].shape[0]
    F = params["w1"].shape[2]
    assert S <= params["pe"].shape[0], "sequence longer than positional-encoding table"
    dh = D // nhead

    # --- input projection + positional encoding (tiny, once per forward; XLA) --
    h0 = (jnp.einsum('bsi,id->bsd', x, params["w_in"])
          + params["b_in"][None, None, :] + params["pe"][:S][None])
    h0 = h0.astype(jnp.float32).reshape(B * S, D)
    # dropout -> identity at inference

    # --- fold 1/sqrt(dh) into the Wq / bq columns (free at runtime) -----------
    scale = 1.0 / float(np.sqrt(dh))
    col_scale = jnp.concatenate([jnp.full((D,), scale, jnp.float32),
                                 jnp.ones((2 * D,), jnp.float32)])
    wqkv = (params["wqkv"].astype(jnp.float32) * col_scale).astype(jnp.bfloat16)
    bqkv = params["bqkv"] * col_scale

    # --- batch-blocked fused encoder stack -------------------------------------
    Bb = _pick_batch_block(B, S)
    kern = functools.partial(encoder_stack_kernel, nhead=nhead, seq_len=S)

    last_h = pl.pallas_call(
        kern,
        out_shape=jax.ShapeDtypeStruct((B, D), jnp.float32),
        grid=(B // Bb, L),
        in_specs=[
            pl.BlockSpec((Bb * S, D),   lambda b, l: (b, 0)),      # h0 (layer-invariant)
            pl.BlockSpec((1, D, 3 * D), lambda b, l: (l, 0, 0)),   # wqkv (bf16, q-scaled)
            pl.BlockSpec((1, 1, 3 * D), lambda b, l: (l, 0, 0)),   # bqkv (f32)
            pl.BlockSpec((1, D, D),     lambda b, l: (l, 0, 0)),   # wo   (bf16)
            pl.BlockSpec((1, D, F),     lambda b, l: (l, 0, 0)),   # w1   (bf16)
            pl.BlockSpec((1, 1, F),     lambda b, l: (l, 0, 0)),   # b1   (f32)
            pl.BlockSpec((1, F, D),     lambda b, l: (l, 0, 0)),   # w2   (bf16)
            pl.BlockSpec((1, 6, D),     lambda b, l: (l, 0, 0)),   # packed bo/LN/b2
        ],
        out_specs=pl.BlockSpec((Bb, D), lambda b, l: (b, 0)),      # resident across l
        scratch_shapes=[pltpu.VMEM((Bb * S, D), jnp.float32)],     # activation
        compiler_params=pltpu.CompilerParams(
            # TODO(synk): pltpu.CORE_PARALLEL on the batch axis for v7x (2 TCs).
            dimension_semantics=("parallel", "arbitrary"),
            # 64 MiB: fine on v5e/v6e (128 MiB physical); cap lower on v7x.
            vmem_limit_bytes=64 * 1024 * 1024),
    )(h0, wqkv, bqkv, params["wo"], params["w1"], params["b1"],
      params["w2"], params["vec"])

    # --- final output projection (D -> O), lane-dense input slab, done in XLA --
    return last_h @ params["w_out"] + params["b_out"][None, :]        # (B, O)


# ----------------------------------------------------------------------------
# Parameters / positional encoding (deterministic, synthetic)
# ----------------------------------------------------------------------------
def make_positional_encoding(d_model, max_len=1000):
    pos = jnp.arange(max_len, dtype=jnp.float32)[:, None]
    div = jnp.exp(jnp.arange(0, d_model, 2, dtype=jnp.float32)
                  * (-np.log(10000.0) / d_model))
    pe = jnp.zeros((max_len, d_model), jnp.float32)
    pe = pe.at[:, 0::2].set(jnp.sin(pos * div))
    pe = pe.at[:, 1::2].set(jnp.cos(pos * div))
    return pe


def init_params(key, input_size, d_model, nhead, num_layers, output_size,
                dim_feedforward=2048):
    # nn.TransformerEncoderLayer defaults: dim_feedforward=2048, relu, post-LN.
    def dense(k, shape, scale=0.05):
        return (scale * jax.random.normal(k, shape)).astype(jnp.float32)

    keys = jax.random.split(key, 2 + 4 * num_layers)
    wqkv = jnp.stack([dense(keys[2 + 4 * l + 0], (d_model, 3 * d_model))
                      for l in range(num_layers)]).astype(jnp.bfloat16)
    wo = jnp.stack([dense(keys[2 + 4 * l + 1], (d_model, d_model))
                    for l in range(num_layers)]).astype(jnp.bfloat16)
    w1 = jnp.stack([dense(keys[2 + 4 * l + 2], (d_model, dim_feedforward))
                    for l in range(num_layers)]).astype(jnp.bfloat16)
    w2 = jnp.stack([dense(keys[2 + 4 * l + 3], (dim_feedforward, d_model))
                    for l in range(num_layers)]).astype(jnp.bfloat16)

    # packed per-layer vectors: [bo, ln1w, ln1b, ln2w, ln2b, b2]
    vec = np.zeros((num_layers, 6, d_model), np.float32)
    vec[:, 1, :] = 1.0   # ln1 weight
    vec[:, 3, :] = 1.0   # ln2 weight

    return {
        "w_in": dense(keys[0], (input_size, d_model)),               # f32
        "b_in": jnp.zeros((d_model,), jnp.float32),
        "w_out": dense(keys[1], (d_model, output_size)),             # f32 (tiny)
        "b_out": jnp.zeros((output_size,), jnp.float32),
        "pe": make_positional_encoding(d_model),
        "wqkv": wqkv,
        "bqkv": jnp.zeros((num_layers, 1, 3 * d_model), jnp.float32),
        "wo": wo, "w1": w1, "w2": w2,
        "b1": jnp.zeros((num_layers, 1, dim_feedforward), jnp.float32),
        "vec": jnp.asarray(vec),
    }


# ----------------------------------------------------------------------------
if __name__ == "__main__":
    batch, seq, input_size = 2, 8, 8
    d_model, nhead, num_layers, output_size = 32, 4, 2, 1

    key = jax.random.PRNGKey(0)
    kx, kp = jax.random.split(key)
    x = jax.random.normal(kx, (batch, seq, input_size), dtype=jnp.float32)
    params = init_params(kp, input_size, d_model, nhead, num_layers, output_size)

    out = transformer_forward(params, x, nhead)
    out = jax.block_until_ready(out)
    assert out.shape == (batch, output_size)
    assert bool(jnp.all(jnp.isfinite(out)))
    print("KERNEL_OK")
</pallas_src>

<mosaic_0001>
module attributes {stable_mosaic.version = 11 : i64} {
  func.func @encoder_stack_kernel(%arg0: i32, %arg1: i32, %arg2: memref<16x32xf32, #tpu.memory_space<vmem>>, %arg3: memref<1x32x96xbf16, #tpu.memory_space<vmem>>, %arg4: memref<1x1x96xf32, #tpu.memory_space<vmem>>, %arg5: memref<1x32x32xbf16, #tpu.memory_space<vmem>>, %arg6: memref<1x32x2048xbf16, #tpu.memory_space<vmem>>, %arg7: memref<1x1x2048xf32, #tpu.memory_space<vmem>>, %arg8: memref<1x2048x32xbf16, #tpu.memory_space<vmem>>, %arg9: memref<1x6x32xf32, #tpu.memory_space<vmem>>, %arg10: memref<2x32xf32, #tpu.memory_space<vmem>>, %arg11: memref<16x32xf32, #tpu.memory_space<vmem>>) attributes {dimension_semantics = [#tpu.dimension_semantics<parallel>, #tpu.dimension_semantics<arbitrary>], iteration_bounds = array<i64: 1, 2>, scalar_prefetch = 0 : i64, scratch_operands = 1 : i64, tpu.core_type = #tpu.core_type<tc>, window_params = [{transform_indices = @transform_0, window_bounds = array<i64: 16, 32>}, {transform_indices = @transform_1, window_bounds = array<i64: 1, 32, 96>}, {transform_indices = @transform_2, window_bounds = array<i64: 1, 1, 96>}, {transform_indices = @transform_3, window_bounds = array<i64: 1, 32, 32>}, {transform_indices = @transform_4, window_bounds = array<i64: 1, 32, 2048>}, {transform_indices = @transform_5, window_bounds = array<i64: 1, 1, 2048>}, {transform_indices = @transform_6, window_bounds = array<i64: 1, 2048, 32>}, {transform_indices = @transform_7, window_bounds = array<i64: 1, 6, 32>}, {transform_indices = @transform_8, window_bounds = array<i64: 2, 32>}]} {
    %c0_i32 = arith.constant 0 : i32
    %0 = arith.cmpi eq, %arg1, %c0_i32 : i32
    %1 = arith.extui %0 : i1 to i32
    %c0_i32_0 = arith.constant 0 : i32
    %2 = arith.cmpi ne, %1, %c0_i32_0 : i32
    scf.if %2 {
      %c0_44 = arith.constant 0 : index
      %c0_45 = arith.constant 0 : index
      %142 = vector.load %arg2[%c0_44, %c0_45] : memref<16x32xf32, #tpu.memory_space<vmem>>, vector<16x32xf32>
      %c0_46 = arith.constant 0 : index
      %c0_47 = arith.constant 0 : index
      %143 = vector.load %arg11[%c0_46, %c0_47] : memref<16x32xf32, #tpu.memory_space<vmem>>, vector<16x32xf32>
      tpu.vector_store %arg11[%c0_46, %c0_47], %142 {strides = array<i32>} : memref<16x32xf32, #tpu.memory_space<vmem>>, vector<16x32xf32>,
    } else {
    }
    %c0 = arith.constant 0 : index
    %c0_1 = arith.constant 0 : index
    %3 = vector.load %arg11[%c0, %c0_1] : memref<16x32xf32, #tpu.memory_space<vmem>>, vector<16x32xf32>
    %c0_2 = arith.constant 0 : index
    %c0_3 = arith.constant 0 : index
    %c0_4 = arith.constant 0 : index
    %4 = vector.load %arg9[%c0_2, %c0_3, %c0_4] : memref<1x6x32xf32, #tpu.memory_space<vmem>>, vector<1x6x32xf32>
    %5 = vector.shape_cast %4 : vector<1x6x32xf32> to vector<6x32xf32>
    %6 = arith.truncf %3 : vector<16x32xf32> to vector<16x32xbf16>
    %c0_5 = arith.constant 0 : index
    %c0_6 = arith.constant 0 : index
    %c0_7 = arith.constant 0 : index
    %7 = vector.load %arg3[%c0_5, %c0_6, %c0_7] : memref<1x32x96xbf16, #tpu.memory_space<vmem>>, vector<1x32x96xbf16>
    %8 = vector.shape_cast %7 : vector<1x32x96xbf16> to vector<32x96xbf16>
    %cst = arith.constant dense<0.000000e+00> : vector<16x96xf32>
    %9 = tpu.matmul %6, %8, %cst {dimension_numbers = #tpu.dot_dimension_numbers<[1], [0], [0], [1], [0, 0, 1, 1], [], []>} : vector<16x32xbf16>, vector<32x96xbf16>, vector<16x96xf32> -> vector<16x96xf32>
    %c0_8 = arith.constant 0 : index
    %c0_9 = arith.constant 0 : index
    %c0_10 = arith.constant 0 : index
    %10 = vector.load %arg4[%c0_8, %c0_9, %c0_10] : memref<1x1x96xf32, #tpu.memory_space<vmem>>, vector<1x1x96xf32>
    %11 = vector.shape_cast %10 : vector<1x1x96xf32> to vector<1x96xf32>
    %12 = vector.broadcast %11 : vector<1x96xf32> to vector<16x96xf32>
    %13 = arith.addf %9, %12 : vector<16x96xf32>
    %14 = arith.truncf %13 : vector<16x96xf32> to vector<16x96xbf16>
    %15 = vector.extract_strided_slice %14 {offsets = [0, 0], sizes = [16, 8], strides = [1, 1]} : vector<16x96xbf16> to vector<16x8xbf16>
    %16 = vector.shape_cast %15 : vector<16x8xbf16> to vector<1x16x8xbf16>
    %17 = vector.extract_strided_slice %14 {offsets = [0, 8], sizes = [16, 8], strides = [1, 1]} : vector<16x96xbf16> to vector<16x8xbf16>
    %18 = vector.shape_cast %17 : vector<16x8xbf16> to vector<1x16x8xbf16>
    %19 = vector.extract_strided_slice %14 {offsets = [0, 16], sizes = [16, 8], strides = [1, 1]} : vector<16x96xbf16> to vector<16x8xbf16>
    %20 = vector.shape_cast %19 : vector<16x8xbf16> to vector<1x16x8xbf16>
    %21 = vector.extract_strided_slice %14 {offsets = [0, 24], sizes = [16, 8], strides = [1, 1]} : vector<16x96xbf16> to vector<16x8xbf16>
    %22 = vector.shape_cast %21 : vector<16x8xbf16> to vector<1x16x8xbf16>
    %23 = tpu.concatenate %16, %18, %20, %22 in 0 : vector<1x16x8xbf16>, vector<1x16x8xbf16>, vector<1x16x8xbf16>, vector<1x16x8xbf16> -> vector<4x16x8xbf16>
    %24 = vector.shape_cast %23 : vector<4x16x8xbf16> to vector<8x8x8xbf16>
    %25 = vector.extract_strided_slice %14 {offsets = [0, 32], sizes = [16, 8], strides = [1, 1]} : vector<16x96xbf16> to vector<16x8xbf16>
    %26 = vector.shape_cast %25 : vector<16x8xbf16> to vector<1x16x8xbf16>
    %27 = vector.extract_strided_slice %14 {offsets = [0, 40], sizes = [16, 8], strides = [1, 1]} : vector<16x96xbf16> to vector<16x8xbf16>
    %28 = vector.shape_cast %27 : vector<16x8xbf16> to vector<1x16x8xbf16>
    %29 = vector.extract_strided_slice %14 {offsets = [0, 48], sizes = [16, 8], strides = [1, 1]} : vector<16x96xbf16> to vector<16x8xbf16>
    %30 = vector.shape_cast %29 : vector<16x8xbf16> to vector<1x16x8xbf16>
    %31 = vector.extract_strided_slice %14 {offsets = [0, 56], sizes = [16, 8], strides = [1, 1]} : vector<16x96xbf16> to vector<16x8xbf16>
    %32 = vector.shape_cast %31 : vector<16x8xbf16> to vector<1x16x8xbf16>
    %33 = tpu.concatenate %26, %28, %30, %32 in 0 : vector<1x16x8xbf16>, vector<1x16x8xbf16>, vector<1x16x8xbf16>, vector<1x16x8xbf16> -> vector<4x16x8xbf16>
    %34 = vector.shape_cast %33 : vector<4x16x8xbf16> to vector<8x8x8xbf16>
    %35 = vector.extract_strided_slice %14 {offsets = [0, 64], sizes = [16, 8], strides = [1, 1]} : vector<16x96xbf16> to vector<16x8xbf16>
    %36 = vector.shape_cast %35 : vector<16x8xbf16> to vector<1x16x8xbf16>
    %37 = vector.extract_strided_slice %14 {offsets = [0, 72], sizes = [16, 8], strides = [1, 1]} : vector<16x96xbf16> to vector<16x8xbf16>
    %38 = vector.shape_cast %37 : vector<16x8xbf16> to vector<1x16x8xbf16>
    %39 = vector.extract_strided_slice %14 {offsets = [0, 80], sizes = [16, 8], strides = [1, 1]} : vector<16x96xbf16> to vector<16x8xbf16>
    %40 = vector.shape_cast %39 : vector<16x8xbf16> to vector<1x16x8xbf16>
    %41 = vector.extract_strided_slice %14 {offsets = [0, 88], sizes = [16, 8], strides = [1, 1]} : vector<16x96xbf16> to vector<16x8xbf16>
    %42 = vector.shape_cast %41 : vector<16x8xbf16> to vector<1x16x8xbf16>
    %43 = tpu.concatenate %36, %38, %40, %42 in 0 : vector<1x16x8xbf16>, vector<1x16x8xbf16>, vector<1x16x8xbf16>, vector<1x16x8xbf16> -> vector<4x16x8xbf16>
    %44 = vector.shape_cast %43 : vector<4x16x8xbf16> to vector<8x8x8xbf16>
    "tpu.trace_start"() <{level = 10 : i32, message = "gqd,gkd->gqk"}> : () -> ()
    %cst_11 = arith.constant dense<0.000000e+00> : vector<8x8x8xf32>
    %45 = tpu.matmul %24, %34, %cst_11 {dimension_numbers = #tpu.dot_dimension_numbers<[2], [2], [1], [1], [0, 0, 0, 1, 1, 1], [0], [0]>} : vector<8x8x8xbf16>, vector<8x8x8xbf16>, vector<8x8x8xf32> -> vector<8x8x8xf32>
    "tpu.trace_stop"() : () -> ()
    %cst_12 = arith.constant dense<0xFF800000> : vector<8x8xf32>
    %46 = vector.multi_reduction <maximumf>, %45, %cst_12 [2] : vector<8x8x8xf32> to vector<8x8xf32>
    %47 = vector.shape_cast %46 : vector<8x8xf32> to vector<8x8x1xf32>
    %48 = vector.broadcast %47 : vector<8x8x1xf32> to vector<8x8x8xf32>
    %49 = arith.subf %45, %48 : vector<8x8x8xf32>
    %50 = math.exp %49 : vector<8x8x8xf32>
    %cst_13 = arith.constant dense<0.000000e+00> : vector<8x8xf32>
    %51 = vector.multi_reduction <add>, %50, %cst_13 [2] : vector<8x8x8xf32> to vector<8x8xf32>
    %52 = vector.shape_cast %51 : vector<8x8xf32> to vector<8x8x1xf32>
    %53 = tpu.reciprocal %52 {approx = true} : vector<8x8x1xf32> -> vector<8x8x1xf32>
    %54 = vector.broadcast %53 : vector<8x8x1xf32> to vector<8x8x8xf32>
    %55 = arith.mulf %50, %54 : vector<8x8x8xf32>
    %56 = arith.truncf %55 : vector<8x8x8xf32> to vector<8x8x8xbf16>
    "tpu.trace_start"() <{level = 10 : i32, message = "gqk,gkd->gqd"}> : () -> ()
    %cst_14 = arith.constant dense<0.000000e+00> : vector<8x8x8xf32>
    %57 = tpu.matmul %56, %44, %cst_14 {dimension_numbers = #tpu.dot_dimension_numbers<[2], [1], [1], [2], [0, 0, 0, 1, 1, 2], [0], [0]>} : vector<8x8x8xbf16>, vector<8x8x8xbf16>, vector<8x8x8xf32> -> vector<8x8x8xf32>
    "tpu.trace_stop"() : () -> ()
    %58 = arith.truncf %57 : vector<8x8x8xf32> to vector<8x8x8xbf16>
    %59 = vector.shape_cast %58 : vector<8x8x8xbf16> to vector<4x16x8xbf16>
    %60 = vector.extract_strided_slice %59 {offsets = [0, 0, 0], sizes = [1, 16, 8], strides = [1, 1, 1]} : vector<4x16x8xbf16> to vector<1x16x8xbf16>
    %61 = vector.shape_cast %60 : vector<1x16x8xbf16> to vector<16x8xbf16>
    %62 = vector.extract_strided_slice %59 {offsets = [1, 0, 0], sizes = [1, 16, 8], strides = [1, 1, 1]} : vector<4x16x8xbf16> to vector<1x16x8xbf16>
    %63 = vector.shape_cast %62 : vector<1x16x8xbf16> to vector<16x8xbf16>
    %64 = vector.extract_strided_slice %59 {offsets = [2, 0, 0], sizes = [1, 16, 8], strides = [1, 1, 1]} : vector<4x16x8xbf16> to vector<1x16x8xbf16>
    %65 = vector.shape_cast %64 : vector<1x16x8xbf16> to vector<16x8xbf16>
    %66 = vector.extract_strided_slice %59 {offsets = [3, 0, 0], sizes = [1, 16, 8], strides = [1, 1, 1]} : vector<4x16x8xbf16> to vector<1x16x8xbf16>
    %67 = vector.shape_cast %66 : vector<1x16x8xbf16> to vector<16x8xbf16>
    %68 = tpu.concatenate %61, %63, %65, %67 in 1 : vector<16x8xbf16>, vector<16x8xbf16>, vector<16x8xbf16>, vector<16x8xbf16> -> vector<16x32xbf16>
    %c0_15 = arith.constant 0 : index
    %c0_16 = arith.constant 0 : index
    %c0_17 = arith.constant 0 : index
    %69 = vector.load %arg5[%c0_15, %c0_16, %c0_17] : memref<1x32x32xbf16, #tpu.memory_space<vmem>>, vector<1x32x32xbf16>
    %70 = vector.shape_cast %69 : vector<1x32x32xbf16> to vector<32x32xbf16>
    %cst_18 = arith.constant dense<0.000000e+00> : vector<16x32xf32>
    %71 = tpu.matmul %68, %70, %cst_18 {dimension_numbers = #tpu.dot_dimension_numbers<[1], [0], [0], [1], [0, 0, 1, 1], [], []>} : vector<16x32xbf16>, vector<32x32xbf16>, vector<16x32xf32> -> vector<16x32xf32>
    %72 = vector.extract_strided_slice %5 {offsets = [0, 0], sizes = [1, 32], strides = [1, 1]} : vector<6x32xf32> to vector<1x32xf32>
    %73 = vector.broadcast %72 : vector<1x32xf32> to vector<16x32xf32>
    %74 = arith.addf %71, %73 : vector<16x32xf32>
    %75 = arith.addf %3, %74 : vector<16x32xf32>
    %76 = vector.extract_strided_slice %5 {offsets = [1, 0], sizes = [1, 32], strides = [1, 1]} : vector<6x32xf32> to vector<1x32xf32>
    %77 = vector.extract_strided_slice %5 {offsets = [2, 0], sizes = [1, 32], strides = [1, 1]} : vector<6x32xf32> to vector<1x32xf32>
    %cst_19 = arith.constant dense<0.000000e+00> : vector<16xf32>
    %78 = vector.multi_reduction <add>, %75, %cst_19 [1] : vector<16x32xf32> to vector<16xf32>
    %79 = vector.shape_cast %78 : vector<16xf32> to vector<16x1xf32>
    %cst_20 = arith.constant 3.200000e+01 : f32
    %80 = vector.broadcast %cst_20 : f32 to vector<16x1xf32>
    %81 = arith.divf %79, %80 : vector<16x1xf32>
    %82 = vector.broadcast %81 : vector<16x1xf32> to vector<16x32xf32>
    %83 = arith.subf %75, %82 : vector<16x32xf32>
    %84 = arith.mulf %83, %83 : vector<16x32xf32>
    %cst_21 = arith.constant dense<0.000000e+00> : vector<16xf32>
    %85 = vector.multi_reduction <add>, %84, %cst_21 [1] : vector<16x32xf32> to vector<16xf32>
    %86 = vector.shape_cast %85 : vector<16xf32> to vector<16x1xf32>
    %cst_22 = arith.constant 3.200000e+01 : f32
    %87 = vector.broadcast %cst_22 : f32 to vector<16x1xf32>
    %88 = arith.divf %86, %87 : vector<16x1xf32>
    %cst_23 = arith.constant 9.99999974E-6 : f32
    %89 = vector.broadcast %cst_23 : f32 to vector<16x1xf32>
    %90 = arith.addf %88, %89 : vector<16x1xf32>
    %91 = math.rsqrt %90 : vector<16x1xf32>
    %92 = vector.broadcast %91 : vector<16x1xf32> to vector<16x32xf32>
    %93 = arith.mulf %83, %92 : vector<16x32xf32>
    %94 = vector.broadcast %76 : vector<1x32xf32> to vector<16x32xf32>
    %95 = arith.mulf %93, %94 : vector<16x32xf32>
    %96 = vector.broadcast %77 : vector<1x32xf32> to vector<16x32xf32>
    %97 = arith.addf %95, %96 : vector<16x32xf32>
    %98 = arith.truncf %97 : vector<16x32xf32> to vector<16x32xbf16>
    %c0_24 = arith.constant 0 : index
    %c0_25 = arith.constant 0 : index
    %c0_26 = arith.constant 0 : index
    %99 = vector.load %arg6[%c0_24, %c0_25, %c0_26] : memref<1x32x2048xbf16, #tpu.memory_space<vmem>>, vector<1x32x2048xbf16>
    %100 = vector.shape_cast %99 : vector<1x32x2048xbf16> to vector<32x2048xbf16>
    %cst_27 = arith.constant dense<0.000000e+00> : vector<16x2048xf32>
    %101 = tpu.matmul %98, %100, %cst_27 {dimension_numbers = #tpu.dot_dimension_numbers<[1], [0], [0], [1], [0, 0, 1, 1], [], []>} : vector<16x32xbf16>, vector<32x2048xbf16>, vector<16x2048xf32> -> vector<16x2048xf32>
    %c0_28 = arith.constant 0 : index
    %c0_29 = arith.constant 0 : index
    %c0_30 = arith.constant 0 : index
    %102 = vector.load %arg7[%c0_28, %c0_29, %c0_30] : memref<1x1x2048xf32, #tpu.memory_space<vmem>>, vector<1x1x2048xf32>
    %103 = vector.shape_cast %102 : vector<1x1x2048xf32> to vector<1x2048xf32>
    %104 = vector.broadcast %103 : vector<1x2048xf32> to vector<16x2048xf32>
    %105 = arith.addf %101, %104 : vector<16x2048xf32>
    %cst_31 = arith.constant 0.000000e+00 : f32
    %106 = vector.broadcast %cst_31 : f32 to vector<16x2048xf32>
    %107 = arith.maximumf %105, %106 : vector<16x2048xf32>
    %108 = arith.truncf %107 : vector<16x2048xf32> to vector<16x2048xbf16>
    %c0_32 = arith.constant 0 : index
    %c0_33 = arith.constant 0 : index
    %c0_34 = arith.constant 0 : index
    %109 = vector.load %arg8[%c0_32, %c0_33, %c0_34] : memref<1x2048x32xbf16, #tpu.memory_space<vmem>>, vector<1x2048x32xbf16>
    %110 = vector.shape_cast %109 : vector<1x2048x32xbf16> to vector<2048x32xbf16>
    %cst_35 = arith.constant dense<0.000000e+00> : vector<16x32xf32>
    %111 = tpu.matmul %108, %110, %cst_35 {dimension_numbers = #tpu.dot_dimension_numbers<[1], [0], [0], [1], [0, 0, 1, 1], [], []>} : vector<16x2048xbf16>, vector<2048x32xbf16>, vector<16x32xf32> -> vector<16x32xf32>
    %112 = vector.extract_strided_slice %5 {offsets = [5, 0], sizes = [1, 32], strides = [1, 1]} : vector<6x32xf32> to vector<1x32xf32>
    %113 = vector.broadcast %112 : vector<1x32xf32> to vector<16x32xf32>
    %114 = arith.addf %111, %113 : vector<16x32xf32>
    %115 = arith.addf %97, %114 : vector<16x32xf32>
    %116 = vector.extract_strided_slice %5 {offsets = [3, 0], sizes = [1, 32], strides = [1, 1]} : vector<6x32xf32> to vector<1x32xf32>
    %117 = vector.extract_strided_slice %5 {offsets = [4, 0], sizes = [1, 32], strides = [1, 1]} : vector<6x32xf32> to vector<1x32xf32>
    %cst_36 = arith.constant dense<0.000000e+00> : vector<16xf32>
    %118 = vector.multi_reduction <add>, %115, %cst_36 [1] : vector<16x32xf32> to vector<16xf32>
    %119 = vector.shape_cast %118 : vector<16xf32> to vector<16x1xf32>
    %cst_37 = arith.constant 3.200000e+01 : f32
    %120 = vector.broadcast %cst_37 : f32 to vector<16x1xf32>
    %121 = arith.divf %119, %120 : vector<16x1xf32>
    %122 = vector.broadcast %121 : vector<16x1xf32> to vector<16x32xf32>
    %123 = arith.subf %115, %122 : vector<16x32xf32>
    %124 = arith.mulf %123, %123 : vector<16x32xf32>
    %cst_38 = arith.constant dense<0.000000e+00> : vector<16xf32>
    %125 = vector.multi_reduction <add>, %124, %cst_38 [1] : vector<16x32xf32> to vector<16xf32>
    %126 = vector.shape_cast %125 : vector<16xf32> to vector<16x1xf32>
    %cst_39 = arith.constant 3.200000e+01 : f32
    %127 = vector.broadcast %cst_39 : f32 to vector<16x1xf32>
    %128 = arith.divf %126, %127 : vector<16x1xf32>
    %cst_40 = arith.constant 9.99999974E-6 : f32
    %129 = vector.broadcast %cst_40 : f32 to vector<16x1xf32>
    %130 = arith.addf %128, %129 : vector<16x1xf32>
    %131 = math.rsqrt %130 : vector<16x1xf32>
    %132 = vector.broadcast %131 : vector<16x1xf32> to vector<16x32xf32>
    %133 = arith.mulf %123, %132 : vector<16x32xf32>
    %134 = vector.broadcast %116 : vector<1x32xf32> to vector<16x32xf32>
    %135 = arith.mulf %133, %134 : vector<16x32xf32>
    %136 = vector.broadcast %117 : vector<1x32xf32> to vector<16x32xf32>
    %137 = arith.addf %135, %136 : vector<16x32xf32>
    %c0_41 = arith.constant 0 : index
    %c0_42 = arith.constant 0 : index
    %138 = vector.load %arg11[%c0_41, %c0_42] : memref<16x32xf32, #tpu.memory_space<vmem>>, vector<16x32xf32>
    tpu.vector_store %arg11[%c0_41, %c0_42], %137 {strides = array<i32>} : memref<16x32xf32, #tpu.memory_space<vmem>>, vector<16x32xf32>,
    %c1_i32 = arith.constant 1 : i32
    %139 = arith.cmpi eq, %arg1, %c1_i32 : i32
    %140 = arith.extui %139 : i1 to i32
    %c0_i32_43 = arith.constant 0 : i32
    %141 = arith.cmpi ne, %140, %c0_i32_43 : i32
    scf.if %141 {
      %142 = vector.extract_strided_slice %137 {offsets = [7, 0], sizes = [1, 32], strides = [1, 1]} : vector<16x32xf32> to vector<1x32xf32>
      %143 = vector.extract_strided_slice %137 {offsets = [15, 0], sizes = [1, 32], strides = [1, 1]} : vector<16x32xf32> to vector<1x32xf32>
      %144 = tpu.concatenate %142, %143 in 0 : vector<1x32xf32>, vector<1x32xf32> -> vector<2x32xf32>
      %c0_44 = arith.constant 0 : index
      %c0_45 = arith.constant 0 : index
      %145 = vector.load %arg10[%c0_44, %c0_45] : memref<2x32xf32, #tpu.memory_space<vmem>>, vector<2x32xf32>
      tpu.vector_store %arg10[%c0_44, %c0_45], %144 {strides = array<i32>} : memref<2x32xf32, #tpu.memory_space<vmem>>, vector<2x32xf32>,
    } else {
    }
    return
  }
  func.func @transform_0(%arg0: i32, %arg1: i32) -> (i32, i32) {
    %c0_i32 = arith.constant 0 : i32
    %c0_i32_0 = arith.constant 0 : i32
    return %arg0, %c0_i32 : i32, i32
  }
  func.func @transform_1(%arg0: i32, %arg1: i32) -> (i32, i32, i32) {
    %c0_i32 = arith.constant 0 : i32
    %c0_i32_0 = arith.constant 0 : i32
    %c0_i32_1 = arith.constant 0 : i32
    return %arg1, %c0_i32, %c0_i32_0 : i32, i32, i32
  }
  func.func @transform_2(%arg0: i32, %arg1: i32) -> (i32, i32, i32) {
    %c0_i32 = arith.constant 0 : i32
    %c0_i32_0 = arith.constant 0 : i32
    %c0_i32_1 = arith.constant 0 : i32
    return %arg1, %c0_i32, %c0_i32_0 : i32, i32, i32
  }
  func.func @transform_3(%arg0: i32, %arg1: i32) -> (i32, i32, i32) {
    %c0_i32 = arith.constant 0 : i32
    %c0_i32_0 = arith.constant 0 : i32
    %c0_i32_1 = arith.constant 0 : i32
    return %arg1, %c0_i32, %c0_i32_0 : i32, i32, i32
  }
  func.func @transform_4(%arg0: i32, %arg1: i32) -> (i32, i32, i32) {
    %c0_i32 = arith.constant 0 : i32
    %c0_i32_0 = arith.constant 0 : i32
    %c0_i32_1 = arith.constant 0 : i32
    return %arg1, %c0_i32, %c0_i32_0 : i32, i32, i32
  }
  func.func @transform_5(%arg0: i32, %arg1: i32) -> (i32, i32, i32) {
    %c0_i32 = arith.constant 0 : i32
    %c0_i32_0 = arith.constant 0 : i32
    %c0_i32_1 = arith.constant 0 : i32
    return %arg1, %c0_i32, %c0_i32_0 : i32, i32, i32
  }
  func.func @transform_6(%arg0: i32, %arg1: i32) -> (i32, i32, i32) {
    %c0_i32 = arith.constant 0 : i32
    %c0_i32_0 = arith.constant 0 : i32
    %c0_i32_1 = arith.constant 0 : i32
    return %arg1, %c0_i32, %c0_i32_0 : i32, i32, i32
  }
  func.func @transform_7(%arg0: i32, %arg1: i32) -> (i32, i32, i32) {
    %c0_i32 = arith.constant 0 : i32
    %c0_i32_0 = arith.constant 0 : i32
    %c0_i32_1 = arith.constant 0 : i32
    return %arg1, %c0_i32, %c0_i32_0 : i32, i32, i32
  }
  func.func @transform_8(%arg0: i32, %arg1: i32) -> (i32, i32) {
    %c0_i32 = arith.constant 0 : i32
    %c0_i32_0 = arith.constant 0 : i32
    return %arg0, %c0_i32 : i32, i32
  }
}

</mosaic_0001>

<bundles_post_ra>
// kernel: tpu_custom_call.1
= control target key start
LH: loop header
LB: loop body
LE: loop exit
PB: predicated region body
PF: predicated region fallthrough
CT: control target
= control target key end

     0   :  { %s6183_s0 = inlined_call_operand.hbm [shape: f32[16,32], index: 0, kind: input, shape index: {}]   ;;  %s6184_s1 = inlined_call_operand.hbm [shape: bf16[2,32,96], index: 1, kind: input, shape index: {}]   ;;  %s6185_s2 = inlined_call_operand.hbm [shape: f32[2,1,96], index: 2, kind: input, shape index: {}]   ;;  %s6186_s3 = inlined_call_operand.hbm [shape: bf16[2,32,32], index: 3, kind: input, shape index: {}]   ;;  %s6187_s4 = inlined_call_operand.hbm [shape: bf16[2,32,2048], index: 4, kind: input, shape index: {}]   ;;  %s6188_s5 = inlined_call_operand.hbm [shape: f32[2,1,2048], index: 5, kind: input, shape index: {}]   ;;  %s6189_s6 = inlined_call_operand.hbm [shape: bf16[2,2048,32], index: 6, kind: input, shape index: {}]   ;;  %s6190_s7 = inlined_call_operand.hbm [shape: f32[2,6,32], index: 7, kind: input, shape index: {}]   ;;  %s6191_s8 = inlined_call_operand.hbm [shape: f32[2,32], index: 8, kind: output, shape index: {}]  }
   0x1   :  { %6207 = sst [smem:[#allocation27_spill]] %s6184_s1 }
   0x2   :  { %6208 = sst [smem:[#allocation28_spill]] %s6186_s3 }
   0x3   :  { %6209 = sst [smem:[#allocation29_spill]] %s6188_s5 }
   0x4   :  { %13 = vsyncpa [#allocation4], 0 }
   0x5   :  { %14 = vsyncpa [#allocation7], 0 }
   0x6   :  { %16 = vsyncpa [#allocation7 + $0x1], 0 }
   0x7   :  { %17 = vsyncpa [#allocation10], 0 }
   0x8   :  { %19 = vsyncpa [#allocation10 + $0x1], 0 }
   0x9   :  { %20 = vsyncpa [#allocation13], 0 }
   0xa   :  { %22 = vsyncpa [#allocation13 + $0x1], 0 }
   0xb   :  { %23 = vsyncpa [#allocation16], 0 }
   0xc   :  { %25 = vsyncpa [#allocation16 + $0x1], 0 }
   0xd   :  { %26 = vsyncpa [#allocation5], 0  ;;  %s5262_s27 = smov 0   ;;  %s5264_s28 = smov 0  }
   0xe   :  { %s5266_s29 = smov 0   ;;  %s5268_s30 = smov 0  }
   0xf   :  { %s5270_s9 = smov 0   ;;  %s5272_s10 = smov 0  }
  0x10 LB: > { %6210 = sst [smem:[#allocation24_spill]] %s5178_s29  ;;  %s41_s11 = sadd.s32 1, %s5186_s9  ;;  %s5190_s10 = sphi %s5272_s10, %s32_s10   ;;  %s5186_s9 = sphi %s5270_s9, %s6241_s9   ;;  %s5182_s30 = sphi %s5268_s30, %s6240_s30   ;;  %s5178_s29 = sphi %s5266_s29, %s6236_s29   ;;  %s5174_s28 = sphi %s5264_s28, %s6239_s28   ;;  %s5170_s27 = sphi %s5262_s27, %s6238_s27  }
  0x11   : > { %s77_s12 = sadd.s32 1, %s5178_s29  ;;  %p42_p0 = scmp.ge.s32.totalorder %s41_s11, 2 }
  0x12   : > { %p84_p1 = scmp.ne.s32.totalorder %s5178_s29, %s5174_s28  ;;  %p85_p2 = scmp.eq.s32.totalorder %s5190_s10, 0 }
  0x13   : > { %s6243_s11 = smov (%p42_p0, %s41_s11), 0  ;;  %p4611_p4 = scmp.lt.s32.totalorder %s5190_s10, 2 }
  0x14   : > { %6211 = sst [smem:[#allocation25_spill]] %s6243_s11  ;;  %p86_p3 = por %p85_p2, %p84_p1 }
  0x15   : > { %s74_s13 = ssub.s32 %s5186_s9, %s6243_s11  ;;  %s5303_s14 = sand.u32 1, %s5190_s10  }
  0x16   : > { %p75_p5 = scmp.eq.s32.totalorder %s74_s13, 0  ;;  %s5306_s15 = sand.u32 1, %s5178_s29  }
  0x17   : > { %s5309_s16 = sshll.u32 %s5186_s9, 8  ;;  %s5315_s18 = sshll.u32 %s5306_s15, 4 }
  0x18   : > { %s5312_s17 = scalar_select %p75_p5, %s5178_s29, %s77_s12  }
  0x19   : > { %s6213_s1 = sld [smem:[#allocation27_spill]]  ;;  %p5323_p6 = pnand %p4611_p4, %p86_p3 }
  0x1a   : > { %6212 = sst [smem:[#allocation26_spill]] %s5312_s17  ;;  %s316_s23 = scalar_lea.vmem [#allocation6], %s5315_s18 }
  0x1b   : > { %s6214_s22 = scalar_select %p5323_p6, 1, 0 }
  0x1c   : > { %s323_s24 = sshll.u32 %s316_s23, 4  ;;  %p5335_p8 = pneg %p5323_p6  ;;  %s5328_s24 = int_to_ptr.vmem [resolvable:$true] %s323_s24 }
  0x1e   : > { %s6215_s12 = scalar_select %p5335_p8, 1, 0 }
  0x1f   : > { %s5321_s21 = scalar_lea.hbm %s6213_s1, %s5309_s16  ;;  %s4861_s20 = scalar_lea.hbm %s6213_s1, 512 }
  0x20   : > { %s4856_s26 = scalar_lea.hbm %s5321_s21, 256  ;;  %p4862_p11 = scmp.lt.u32.totalorder %s5321_s21, %s6213_s1 }
  0x21   : > { %p4857_p7 = scmp.ne.s32.totalorder %s5321_s21, %s4856_s26  ;;  %p4863_p12 = scmp.lt.u32.totalorder %s4861_s20, %s4856_s26 }
  0x22   : > { %p4865_p0 = scmp.lt.u32.totalorder %s4856_s26, %s5321_s21 }
  0x23   : > { %p4859_p9 = pnand %p5335_p8, %p4857_p7  ;;  %p4864_p13 = por %p4863_p12, %p4862_p11 }
  0x25   : > { %p4860_p10 = pneg %p4859_p9  ;;  %p4866_p1 = por %p4865_p0, %p4864_p13 }
  0x27   : > { %p4867_p2 = pnand %p4866_p1, %p4860_p10 }
  0x29   : > { %4870 = shalt.err (!%p4867_p2)
}
  0x2a   : > { %s4871_s25 = scalar_lea.vmem %s5328_s24, 256  ;;  %s5192_s13 = smov [#allocation6]  }
  0x2b   : > { %p4872_p3 = scmp.ne.s32.totalorder %s5328_s24, %s4871_s25  ;;  %s4876_s19 = sshll.u32 %s5192_s13, 4  ;;  %s4877_s19 = int_to_ptr.vmem [resolvable:$false] %s4876_s19 }
  0x2c   : > { %s4878_s11 = scalar_lea.vmem %s4877_s19, 512  ;;  %p4879_p7 = scmp.lt.s32.totalorder %s5328_s24, %s4877_s19 }
  0x2d   : > { %p4874_p4 = pnand %p4872_p3, %p5335_p8  ;;  %p4880_p9 = scmp.lt.s32.totalorder %s4878_s11, %s4871_s25 }
  0x2f   : > { %p4875_p5 = pneg %p4874_p4  ;;  %p4881_p11 = por %p4880_p9, %p4879_p7 }
  0x31   : > { %p4882_p12 = pnand %p4881_p11, %p4875_p5 }
  0x33   : > { %4885 = shalt.err (!%p4882_p12)
}
  0x34   : > { %s6199_s26 = smov 64   ;;  %s6197_s20 = smov 4  }
  0x35   : > { %s6216_s23 = scalar_lea.sflag [#allocation7], %s5303_s14  ;;  %s6217_s3 = sld [smem:[#allocation28_spill]] }
  0x36   : > { %4591 = dma.hbm_to_vmem [thread:$0]  (!%p5323_p6), %s5321_s21, 256, %s5328_s24, %s6216_s23, %s6199_s26, %s6199_s26, %s6197_s20  }
  0x37   : > { %s354_s11 = scalar_lea.vmem [#allocation9], %s5315_s18  ;;  %s6198_s17 = scalar_lea.sflag [#allocation10], %s5303_s14 }
  0x38   : > { %s361_s1 = sshll.u32 %s354_s11, 4  ;;  %s5370_s1 = int_to_ptr.vmem [resolvable:$true] %s361_s1 }
  0x3b   : > { %s5367_s19 = scalar_lea.hbm %s6217_s3, %s5309_s16  ;;  %s4891_s23 = scalar_lea.hbm %s6217_s3, 512 }
  0x3c   : > { %s4886_s29 = scalar_lea.hbm %s5367_s19, 256  ;;  %p4892_p1 = scmp.lt.u32.totalorder %s5367_s19, %s6217_s3 }
  0x3d   : > { %p4887_p10 = scmp.ne.s32.totalorder %s5367_s19, %s4886_s29  ;;  %p4893_p2 = scmp.lt.u32.totalorder %s4891_s23, %s4886_s29 }
  0x3e   : > { %p4895_p4 = scmp.lt.u32.totalorder %s4886_s29, %s5367_s19 }
  0x3f   : > { %p4889_p13 = pnand %p4887_p10, %p5335_p8  ;;  %p4894_p3 = por %p4893_p2, %p4892_p1 }
  0x41   : > { %p4890_p0 = pneg %p4889_p13  ;;  %p4896_p5 = por %p4895_p4, %p4894_p3 }
  0x43   : > { %p4897_p7 = pnand %p4896_p5, %p4890_p0 }
  0x45   : > { %4900 = shalt.err (!%p4897_p7)
}
  0x46   : > { %s4901_s11 = scalar_lea.vmem %s5370_s1, 256  ;;  %s5195_s21 = smov [#allocation9]  }
  0x47   : > { %p4902_p9 = scmp.ne.s32.totalorder %s5370_s1, %s4901_s11  ;;  %s4906_s24 = sshll.u32 %s5195_s21, 4  ;;  %s4907_s24 = int_to_ptr.vmem [resolvable:$false] %s4906_s24 }
  0x48   : > { %s4908_s25 = scalar_lea.vmem %s4907_s24, 512  ;;  %p4909_p10 = scmp.lt.s32.totalorder %s5370_s1, %s4907_s24 }
  0x49   : > { %p4904_p11 = pnand %p4902_p9, %p5335_p8  ;;  %p4910_p13 = scmp.lt.s32.totalorder %s4908_s25, %s4901_s11 }
  0x4b   : > { %p4905_p12 = pneg %p4904_p11  ;;  %p4911_p1 = por %p4910_p13, %p4909_p10 }
  0x4d   : > { %p4912_p2 = pnand %p4911_p1, %p4905_p12 }
  0x4f   : > { %4915 = shalt.err (!%p4912_p2)
}
  0x50   : > { %4597 = dma.hbm_to_vmem [thread:$0]  (!%p5323_p6), %s5367_s19, 256, %s5370_s1, %s6198_s17, %s6199_s26, %s6199_s26, %s6197_s20  }
  0x51   : > { %s6218_s5 = sld [smem:[#allocation29_spill]]  ;;  %s396_s11 = scalar_lea.vmem [#allocation12], %s5315_s18 }
  0x52   : > { %s404_s21 = sshll.u32 %s396_s11, 4  ;;  %s6196_s24 = scalar_lea.sflag [#allocation13], %s5303_s14  ;;  %s405_s21 = int_to_ptr.vmem [resolvable:$true] %s404_s21 }
  0x57   : > { %s5403_s13 = scalar_lea.hbm %s6218_s5, %s5309_s16  ;;  %s4921_s19 = scalar_lea.hbm %s6218_s5, 512 }
  0x58   : > { %s4916_s25 = scalar_lea.hbm %s5403_s13, 256  ;;  %p4922_p5 = scmp.lt.u32.totalorder %s5403_s13, %s6218_s5 }
  0x59   : > { %p4917_p0 = scmp.ne.s32.totalorder %s5403_s13, %s4916_s25  ;;  %p4923_p7 = scmp.lt.u32.totalorder %s4921_s19, %s4916_s25 }
  0x5a   : > { %p4925_p11 = scmp.lt.u32.totalorder %s4916_s25, %s5403_s13 }
  0x5b   : > { %p4919_p3 = pnand %p4917_p0, %p5335_p8  ;;  %p4924_p9 = por %p4923_p7, %p4922_p5 }
  0x5d   : > { %p4920_p4 = pneg %p4919_p3  ;;  %p4926_p12 = por %p4925_p11, %p4924_p9 }
  0x5f   : > { %p4927_p10 = pnand %p4926_p12, %p4920_p4 }
  0x61   : > { %4930 = shalt.err (!%p4927_p10)
}
  0x62   : > { %s4931_s18 = scalar_lea.vmem %s405_s21, 256  ;;  %s5196_s23 = smov [#allocation12]  }
  0x63   : > { %p4932_p13 = scmp.ne.s32.totalorder %s405_s21, %s4931_s18  ;;  %s4936_s11 = sshll.u32 %s5196_s23, 4  ;;  %s4937_s11 = int_to_ptr.vmem [resolvable:$false] %s4936_s11 }
  0x64   : > { %s4938_s3 = scalar_lea.vmem %s4937_s11, 512  ;;  %p4939_p0 = scmp.lt.s32.totalorder %s405_s21, %s4937_s11 }
  0x65   : > { %p4934_p1 = pnand %p4932_p13, %p5335_p8  ;;  %p4940_p3 = scmp.lt.s32.totalorder %s4938_s3, %s4931_s18 }
  0x67   : > { %p4935_p2 = pneg %p4934_p1  ;;  %p4941_p6 = por %p4940_p3, %p4939_p0 }
  0x69   : > { %p4942_p5 = pnand %p4941_p6, %p4935_p2 }
  0x6b   : > { %4945 = shalt.err (!%p4942_p5)
}
  0x6c   : > { %p6219_p7 = scmp.ne.s32.totalorder %s6214_s22, 0  ;;  %s5427_s25 = sadd.s32 4294967295, %s5190_s10  }
  0x6d   : > { %p90_p6 = scmp.ne.s32.totalorder %s5174_s28, %s5170_s27  ;;  %p6201_p4 = scmp.eq.s32.totalorder %s5427_s25, 0 }
  0x6e   : > { %4603 = dma.hbm_to_vmem [thread:$0]  (!%p6219_p7), %s5403_s13, 256, %s405_s21, %s6196_s24  }
  0x6f   : > { %p3987_p9 = scmp.ge.s32.totalorder %s5190_s10, 1  ;;  %p283_p11 = scmp.lt.s32.totalorder %s5190_s10, 3 }
  0x70   : > { %p5436_p12 = por %p6201_p4, %p90_p6  ;;  %s5197_s13 = smov [#allocation3]  }
  0x71   : > { %p5440_p10 = pnand %p3987_p9, %p283_p11  ;;  %s298_s21 = sshll.u32 %s5197_s13, 4  ;;  %s5446_s21 = int_to_ptr.vmem [resolvable:$true] %s298_s21 }
  0x72   : > { %s6220_s1 = scalar_select %p5436_p12, 1, 0 }
  0x73   : > { %s6221_s19 = scalar_select %p5440_p10, 1, 0 }
  0x74   : > { %p4584_p13 = pneg %p5440_p10  ;;  %s3993_s29 = sshll.u32 %s5186_s9, 4 }
  0x75   : > { %s5458_s23 = scalar_lea.hbm %s6185_s2, %s3993_s29  ;;  %s336_s11 = scalar_lea.vmem [#allocation8], %s5306_s15 }
  0x76   : > { %p5450_p1 = pnand %p4584_p13, %p6201_p4  ;;  %s343_s3 = sshll.u32 %s336_s11, 4  ;;  %s5461_s3 = int_to_ptr.vmem [resolvable:$true] %s343_s3 }
  0x77   : > { %s4946_s20 = scalar_lea.hbm %s6183_s0, 256 }
  0x78   : > { %p4947_p2 = scmp.ne.s32.totalorder %s6183_s0, %s4946_s20  ;;  %p4948_p0 = pneg %p5450_p1 }
  0x79   : > { %p4953_p6 = scmp.lt.u32.totalorder %s4946_s20, %s6183_s0 }
  0x7a   : > { %p4949_p3 = pnand %p4948_p0, %p4947_p2 }
  0x7c   : > { %p4950_p5 = pneg %p4949_p3 }
  0x7e   : > { %p4955_p9 = pnand %p4953_p6, %p4950_p5 }
  0x80   : > { %4958 = shalt.err (!%p4955_p9)
}
  0x81   : > { %s4959_s29 = scalar_lea.vmem %s5446_s21, 256  ;;  %p4967_p12 = scmp.lt.s32.totalorder %s5446_s21, %s5446_s21 }
  0x82   : > { %p4960_p11 = scmp.ne.s32.totalorder %s5446_s21, %s4959_s29  ;;  %p4968_p10 = scmp.lt.s32.totalorder %s4959_s29, %s4959_s29 }
  0x84   : > { %p4962_p13 = pnand %p4960_p11, %p4948_p0  ;;  %p4969_p7 = por %p4968_p10, %p4967_p12 }
  0x86   : > { %p4963_p4 = pneg %p4962_p13 }
  0x88   : > { %p4970_p8 = pnand %p4969_p7, %p4963_p4 }
  0x8a   : > { %4973 = shalt.err (!%p4970_p8)
}
  0x8b   : > { %s5198_s17 = smov 128   ;;  %s5199_s5 = smov 8  }
  0x8c   : > { %4587 = dma.hbm_to_vmem [thread:$0]  (!%p5450_p1), %s6183_s0, 256, %s5446_s21, [#allocation4], %s5198_s17, %s5198_s17, %s5199_s5  }
  0x8d   : > { %s4974_s24 = scalar_lea.hbm %s5458_s23, 16  ;;  %p6223_p0 = scmp.ne.s32.totalorder %s6215_s12, 0 }
  0x8e   : > { %p4975_p2 = scmp.ne.s32.totalorder %s5458_s23, %s4974_s24  ;;  %s4979_s13 = scalar_lea.hbm %s6185_s2, 32 }
  0x8f   : > { %p4980_p8 = scmp.lt.u32.totalorder %s5458_s23, %s6185_s2  ;;  %p4981_p4 = scmp.lt.u32.totalorder %s4979_s13, %s4974_s24 }
  0x90   : > { %p4977_p12 = pnand %p4975_p2, %p6223_p0  ;;  %p4983_p3 = scmp.lt.u32.totalorder %s4974_s24, %s5458_s23 }
  0x91   : > { %p4982_p10 = por %p4981_p4, %p4980_p8 }
  0x92   : > { %p4978_p7 = pneg %p4977_p12 }
  0x93   : > { %p4984_p5 = por %p4983_p3, %p4982_p10 }
  0x95   : > { %p4985_p6 = pnand %p4984_p5, %p4978_p7 }
  0x97   : > { %4988 = shalt.err (!%p4985_p6)
}
  0x98   : > { %s4989_s21 = scalar_lea.vmem %s5461_s3, 16  ;;  %s5200_s27 = smov [#allocation8]  }
  0x99   : > { %p4990_p1 = scmp.ne.s32.totalorder %s5461_s3, %s4989_s21  ;;  %s4994_s17 = sshll.u32 %s5200_s27, 4  ;;  %s4995_s17 = int_to_ptr.vmem [resolvable:$false] %s4994_s17 }
  0x9a   : > { %s4996_s5 = scalar_lea.vmem %s4995_s17, 32  ;;  %p4997_p13 = scmp.lt.s32.totalorder %s5461_s3, %s4995_s17 }
  0x9b   : > { %p4992_p9 = pnand %p4990_p1, %p6223_p0  ;;  %p4998_p2 = scmp.lt.s32.totalorder %s4996_s5, %s4989_s21 }
  0x9d   : > { %p4993_p11 = pneg %p4992_p9  ;;  %p4999_p12 = por %p4998_p2, %p4997_p13 }
  0x9f   : > { %p5000_p8 = pnand %p4999_p12, %p4993_p11 }
  0xa1   : > { %5003 = shalt.err (!%p5000_p8)
}
  0xa2   : > { %p6224_p7 = scmp.ne.s32.totalorder %s6214_s22, 0  ;;  %s6225_s26 = scalar_lea.sflag [#allocation7], %s5303_s14 }
  0xa3   : > { %s3997_s20 = sshll.u32 %s5306_s15, 8  ;;  %s4227_s24 = sshll.u32 %s5186_s9, 12 }
  0xa4   : > { %4594 = dma.hbm_to_vmem [thread:$0]  (!%p6224_p7), %s5458_s23, 16, %s5461_s3, %s6225_s26  }
  0xa5   : > { %s5512_s13 = scalar_lea.hbm %s6187_s4, %s4227_s24  ;;  %s375_s16 = scalar_lea.vmem [#allocation11], %s3997_s20 }
  0xa6   : > { %s382_s29 = sshll.u32 %s375_s16, 4  ;;  %s4003_s21 = sshll.u32 %s5306_s15, 10  ;;  %s5514_s29 = int_to_ptr.vmem [resolvable:$true] %s382_s29 }
  0xa7   : > { %s5004_s27 = scalar_lea.hbm %s5512_s13, 4096  ;;  %s5009_s17 = scalar_lea.hbm %s6187_s4, 8192 }
  0xa8   : > { %p5005_p4 = scmp.ne.s32.totalorder %s5512_s13, %s5004_s27  ;;  %p5010_p5 = scmp.lt.u32.totalorder %s5512_s13, %s6187_s4 }
  0xa9   : > { %p5011_p6 = scmp.lt.u32.totalorder %s5009_s17, %s5004_s27  ;;  %p5013_p9 = scmp.lt.u32.totalorder %s5004_s27, %s5512_s13 }
  0xaa   : > { %p5007_p10 = pnand %p5005_p4, %p6223_p0 }
  0xab   : > { %p5012_p1 = por %p5011_p6, %p5010_p5 }
  0xac   : > { %p5008_p3 = pneg %p5007_p10 }
  0xad   : > { %p5014_p11 = por %p5013_p9, %p5012_p1 }
  0xaf   : > { %p5015_p13 = pnand %p5014_p11, %p5008_p3 }
  0xb1   : > { %5018 = shalt.err (!%p5015_p13)
}
  0xb2   : > { %s5019_s20 = scalar_lea.vmem %s5514_s29, 4096  ;;  %s5201_s24 = smov [#allocation11]  }
  0xb3   : > { %p5020_p2 = scmp.ne.s32.totalorder %s5514_s29, %s5019_s20  ;;  %s5024_s18 = sshll.u32 %s5201_s24, 4  ;;  %s5025_s18 = int_to_ptr.vmem [resolvable:$false] %s5024_s18 }
  0xb4   : > { %s5026_s11 = scalar_lea.vmem %s5025_s18, 8192  ;;  %p5027_p4 = scmp.lt.s32.totalorder %s5514_s29, %s5025_s18 }
  0xb5   : > { %p5022_p12 = pnand %p5020_p2, %p6223_p0  ;;  %p5028_p10 = scmp.lt.s32.totalorder %s5026_s11, %s5019_s20 }
  0xb7   : > { %p5023_p8 = pneg %p5022_p12  ;;  %p5029_p5 = por %p5028_p10, %p5027_p4 }
  0xb9   : > { %p5030_p6 = pnand %p5029_p5, %p5023_p8 }
  0xbb   : > { %5033 = shalt.err (!%p5030_p6)
}
  0xbc   : > { %s5202_s16 = smov 1024   ;;  %s6226_s27 = smov 64  }
  0xbd   : > { %s6227_s23 = scalar_lea.sflag [#allocation10], %s5303_s14  ;;  %s4229_s3 = sshll.u32 %s5186_s9, 14 }
  0xbe   : > { %4600 = dma.hbm_to_vmem [thread:$0]  (!%p6224_p7), %s5512_s13, 4096, %s5514_s29, %s6227_s23, %s5202_s16, %s5202_s16, %s6226_s27  }
  0xbf   : > { %s5545_s26 = scalar_lea.hbm %s6189_s6, %s4229_s3  ;;  %s415_s20 = scalar_lea.vmem [#allocation14], %s4003_s21 }
  0xc0   : > { %s422_s24 = sshll.u32 %s415_s20, 4  ;;  %s5034_s18 = scalar_lea.hbm %s5545_s26, 16384  ;;  %s5549_s24 = int_to_ptr.vmem [resolvable:$true] %s422_s24 }
  0xc1   : > { %p5035_p3 = scmp.ne.s32.totalorder %s5545_s26, %s5034_s18  ;;  %s5039_s11 = scalar_lea.hbm %s6189_s6, 32768 }
  0xc2   : > { %p5040_p11 = scmp.lt.u32.totalorder %s5545_s26, %s6189_s6  ;;  %p5041_p13 = scmp.lt.u32.totalorder %s5039_s11, %s5034_s18 }
  0xc3   : > { %p5037_p1 = pnand %p5035_p3, %p6223_p0  ;;  %p5043_p12 = scmp.lt.u32.totalorder %s5034_s18, %s5545_s26 }
  0xc4   : > { %p5042_p2 = por %p5041_p13, %p5040_p11 }
  0xc5   : > { %p5038_p9 = pneg %p5037_p1 }
  0xc6   : > { %p5044_p8 = por %p5043_p12, %p5042_p2 }
  0xc8   : > { %p5045_p4 = pnand %p5044_p8, %p5038_p9 }
  0xca   : > { %5048 = shalt.err (!%p5045_p4)
}
  0xcb   : > { %s5049_s21 = scalar_lea.vmem %s5549_s24, 16384  ;;  %s5203_s3 = smov [#allocation14]  }
  0xcc   : > { %p5050_p10 = scmp.ne.s32.totalorder %s5549_s24, %s5049_s21  ;;  %s5054_s17 = sshll.u32 %s5203_s3, 4  ;;  %s5055_s17 = int_to_ptr.vmem [resolvable:$false] %s5054_s17 }
  0xcd   : > { %s5056_s5 = scalar_lea.vmem %s5055_s17, 32768  ;;  %p5057_p3 = scmp.lt.s32.totalorder %s5549_s24, %s5055_s17 }
  0xce   : > { %p5052_p5 = pnand %p5050_p10, %p6223_p0  ;;  %p5058_p1 = scmp.lt.s32.totalorder %s5056_s5, %s5049_s21 }
  0xd0   : > { %p5053_p6 = pneg %p5052_p5  ;;  %p5059_p11 = por %p5058_p1, %p5057_p3 }
  0xd2   : > { %p5060_p13 = pnand %p5059_p11, %p5053_p6 }
  0xd4   : > { %5063 = shalt.err (!%p5060_p13)
}
  0xd5   : > { %s6228_s20 = smov 4   ;;  %s6229_s18 = scalar_lea.sflag [#allocation13], %s5303_s14 }
  0xd6   : > { %4606 = dma.hbm_to_vmem [thread:$0]  (!%p6224_p7), %s5545_s26, 16384, %s5549_s24, %s6229_s18, %s6226_s27, %s6226_s27, %s6228_s20  }
  0xd7   : > { %s4006_s13 = sshll.u32 %s5306_s15, 3  ;;  %s4007_s29 = sshll.u32 %s5186_s9, 7 }
  0xd8   : > { %s5582_s23 = scalar_lea.hbm %s6190_s7, %s4007_s29  ;;  %s436_s21 = scalar_lea.vmem [#allocation15], %s4006_s13 }
  0xd9   : > { %s443_s14 = sshll.u32 %s436_s21, 4  ;;  %s433_s3 = scalar_lea.sflag [#allocation16], %s5306_s15  ;;  %s444_s14 = int_to_ptr.vmem [resolvable:$true] %s443_s14 }
  0xda   : > { %s5064_s17 = scalar_lea.hbm %s5582_s23, 128  ;;  %s5069_s24 = scalar_lea.hbm %s6190_s7, 256 }
  0xdb   : > { %p5065_p9 = scmp.ne.s32.totalorder %s5582_s23, %s5064_s17  ;;  %p5070_p8 = scmp.lt.u32.totalorder %s5582_s23, %s6190_s7 }
  0xdc   : > { %p5071_p4 = scmp.lt.u32.totalorder %s5069_s24, %s5064_s17  ;;  %p5073_p5 = scmp.lt.u32.totalorder %s5064_s17, %s5582_s23 }
  0xdd   : > { %p5067_p2 = pnand %p5065_p9, %p6223_p0 }
  0xde   : > { %p5072_p10 = por %p5071_p4, %p5070_p8 }
  0xdf   : > { %p5068_p12 = pneg %p5067_p2 }
  0xe0   : > { %p5074_p6 = por %p5073_p5, %p5072_p10 }
  0xe2   : > { %p5075_p3 = pnand %p5074_p6, %p5068_p12 }
  0xe4   : > { %5078 = shalt.err (!%p5075_p3)
}
  0xe5   : > { %s5079_s15 = scalar_lea.vmem %s444_s14, 128  ;;  %s5204_s18 = smov [#allocation15]  }
  0xe6   : > { %p5080_p1 = scmp.ne.s32.totalorder %s444_s14, %s5079_s15  ;;  %s5084_s13 = sshll.u32 %s5204_s18, 4  ;;  %s5085_s13 = int_to_ptr.vmem [resolvable:$false] %s5084_s13 }
  0xe7   : > { %s5086_s29 = scalar_lea.vmem %s5085_s13, 256  ;;  %p5087_p9 = scmp.lt.s32.totalorder %s444_s14, %s5085_s13 }
  0xe8   : > { %p5082_p11 = pnand %p5080_p1, %p6223_p0  ;;  %p5088_p2 = scmp.lt.s32.totalorder %s5086_s29, %s5079_s15 }
  0xea   : > { %p5083_p13 = pneg %p5082_p11  ;;  %p5089_p7 = por %p5088_p2, %p5087_p9 }
  0xec   : > { %p5090_p4 = pnand %p5089_p7, %p5083_p13 }
  0xee   : > { %5093 = shalt.err (!%p5090_p4)
}
  0xef   : > { %p6230_p8 = scmp.ne.s32.totalorder %s6214_s22, 0  ;;  %p6231_p12 = scmp.ne.s32.totalorder %s6221_s19, 0 }
  0xf0   : > { %p6232_p10 = scmp.eq.s32.totalorder (!%p6231_p12), %s5427_s25, 0 }
  0xf1   : > { %4609 = dma.hbm_to_vmem [thread:$0]  (!%p6230_p8), %s5582_s23, 128, %s444_s14, %s433_s3  }
  0xf2   : > { %452 = sbr.rel (%p6231_p12) target bundleno = 3078 (0xc06), region = 52 }
  0xf9   : > { %5145 = dma.done.wait (%p6232_p10), [#allocation4], 256   ;;  %p6233_p0 = pmov %p6232_p10 }
  0xfa   : > { %s458_s12 = sand.u32 1, %s5427_s25   ;;  %s5610_s11 = sand.u32 1, %s5174_s28  }
  0xfb   : > { %5147 = vsyncadd (%p6233_p0), [#allocation4], 4294967040  ;;  %s5613_s16 = sshll.u32 %s5610_s11, 4  ;;  %s459_s22 = scalar_lea.sflag [#allocation7], %s458_s12 }
  0xfc   : > { %s462_s23 = scalar_lea.vmem [#allocation6], %s5613_s16  ;;  %p6234_p7 = scmp.ne.s32.totalorder %s6220_s1, 0 }
  0xfe   : > { %5149 = dma.done.wait (%p6234_p7), %s459_s22, 272  }
  0xff   : > { %5151 = vsyncadd (%p6234_p7), %s459_s22, 4294967024  ;;  %s470_s19 = scalar_lea.vmem [#allocation8], %s5610_s11  ;;  %s476_s21 = scalar_lea.sflag [#allocation10], %s458_s12 }
 0x100   : > { %s479_s14 = scalar_lea.vmem [#allocation9], %s5613_s16 }
 0x101   : > { %5153 = dma.done.wait (%p6234_p7), %s476_s21, 4352  }
 0x102   : > { %5155 = vsyncadd (%p6234_p7), %s476_s21, 4294962944  ;;  %s4012_s3 = sshll.u32 %s5610_s11, 8  ;;  %s494_s27 = scalar_lea.sflag [#allocation13], %s458_s12 }
 0x103   : > { %s5627_s17 = scalar_lea.vmem [#allocation11], %s4012_s3  ;;  %s497_s26 = scalar_lea.vmem [#allocation12], %s5613_s16 }
 0x104   : > { %5157 = dma.done.wait (%p6234_p7), %s494_s27, 16640  }
 0x105   : > { %5159 = vsyncadd (%p6234_p7), %s494_s27, 4294950656  ;;  %s4014_s24 = sshll.u32 %s5610_s11, 10  ;;  %s4015_s5 = sshll.u32 %s5610_s11, 3 }
 0x106   : > { %s5636_s20 = scalar_lea.vmem [#allocation14], %s4014_s24  ;;  %s512_s15 = scalar_lea.sflag [#allocation16], %s5610_s11 }
 0x107   : > { %s5639_s18 = scalar_lea.vmem [#allocation15], %s4015_s5 }
 0x108   : > { %5161 = dma.done.wait (%p6234_p7), %s512_s15, 128  }
 0x109   : > { %5163 = vsyncadd (%p6234_p7), %s512_s15, 4294967168  ;;  %p4016_p5 = scmp.ne.s32.totalorder %s5182_s30, 0 }
 0x10a   : > { %v578_v0 = vld [vmem:[#allocation3] sm:$0xff] (!%p4016_p5)  ;;  %vm580_vm0 = vcmask (!%p4016_p5), 261120   ;;  %v579_v1 = vld [vmem:[#allocation3 + $0x8] sm:$0xff] (!%p4016_p5) }
 0x10b   : > { %577 = sbr.rel (%p4016_p5) target bundleno = 274 (0x112), region = 88  ;;  %581 = vst.msk [vmem:[#allocation2] sm:$0xff] (!%p4016_p5), %vm580_vm0, %v578_v0  ;;  %582 = vst.msk [vmem:[#allocation2 + $0x8] sm:$0xff] (!%p4016_p5), %vm580_vm0, %v579_v1 }
 0x112 PF: > { %v4681_v2 = vld [vmem:[%s462_s23] sm:$0xff]   ;;  %v5205_v3 = vmov 0.0   ;;  %v4682_v4 = vld [vmem:[%s462_s23 + $0x8] sm:$0xff]   ;;  %vm5206_vm1 = vmmov 0   ;;  %vm610_vm2 = vcmask 261120   ;;  %s5207_s1 = smov 104  }
 0x113   : > { %4450 = vmatprep.subr.bf16.mxu0 %v5205_v3  ;;  %4458 = vmatprep.subr.bf16.mxu1 %v5205_v3  ;;  %v583_v5 = vld [vmem:[#allocation2] sm:$0xff]  ;;  %v584_v6 = vld [vmem:[#allocation2 + $0x8] sm:$0xff]  ;;  %s5208_s13 = smov 120   ;;  %s5209_s29 = smov 96   ;;  %vm681_vm3 = vcmask 64512   ;;  %vm1165_vm4 = vcmask 1043456  }
 0x114   : > { %4451 = vmatpush3.bf16.msra.mxu0 %v4681_v2  ;;  %4454 = vmatprep.mubr.msk.bf16.mxu0 %vm5206_vm1, %v5205_v3  ;;  %v586_v7 = vpack.c.bf16 %v584_v6, %v583_v5  ;;  %v4017_v8 = vld [vmem:[%s470_s19] ss:$0 sm:$0xff]  ;;  %s5210_s12 = smov 112   ;;  %s5211_s11 = smov 64   ;;  %vm1582_vm5 = vcmask 130048   ;;  %vm1585_vm6 = vcmask 195584  }
 0x115   : > { %4452 = vmatprep.subr.bf16.mxu0 %v5205_v3  ;;  %4460 = vmatprep.mubr.msk.bf16.mxu1 %vm5206_vm1, %v5205_v3  ;;  %s5212_s22 = smov 8   ;;  %s5213_s23 = smov 16  }
 0x116   : > { %s5214_s19 = smov 24   ;;  %p4220_p6 = scmp.ne.s32.totalorder %s5182_s30, 1 }
 0x117   : > { %vm3772_vm7 = vcmask (!%p4220_p6), 1040384   ;;  %vm3774_vm8 = vcmask (!%p4220_p6), 254976  }
 0x118   : > { %4453 = vmatpush3.bf16.msra.mxu0 %v4682_v4 }
 0x119   : > { %4464 = vmatprep.subr.bf16.mxu0 %v5205_v3 }
 0x11b   : > { %4455 = vmatmul.mubr.msk.bf16.vlgmr.msra.gmra.mrb[0].mxu0 %vm610_vm2, %v586_v7 }
 0x11c   : > { %4466 = vmatprep.mubr.msk.bf16.mxu0 %vm5206_vm1, %v5205_v3 }
 0x1ee   : > { %v648_v9 = vpop.f32.mrb[0].mxu0 }
 0x1ef   : > { %v4456_v10 = vpop.f32.mrb[1].mxu0  ;;  %v649_v12 = vadd.f32 %v4017_v8, %v648_v9 }
 0x1f0   : > { %v651_v11 = vpop.f32.mrb[2].mxu0 }
 0x1f1   : > { %v652_v13 = vadd.f32 %v4017_v8, %v651_v11  ;;  %v4457_v14 = vpop.f32.mrb[3].mxu0  ;;  %v4230_v16 = vpack.c.bf16 %v649_v12, %v649_v12 }
 0x1f3   : > { %v655_v15 = vpack.c.bf16 %v652_v13, %v649_v12  ;;  %v4231_v17 = vpack.c.bf16 %v652_v13, %v652_v13 }
 0x1f5   : > { %661 = vrot.lane.b32.xlu1 %v655_v15, %s5207_s1  ;;  %657 = vrot.lane.b32.xlu0 %v655_v15, %s5208_s13 }
 0x1f9   : > { %679 = vrot.lane.b32.xlu1 %v4230_v16, %s5209_s29  ;;  %659 = vrot.lane.b32.xlu0 %v655_v15, %s5210_s12 }
 0x1fd   : > { %728 = vrot.lane.b32.xlu0 %v4231_v17, %s5209_s29 }
 0x267   : > { %v662_v18 = vpop.permute.xlu1 %661  ;;  %v658_v19 = vpop.permute.xlu0 %657 }
 0x268   : > { %v5663_v20 = vcombine.low %v658_v19, %v658_v19  ;;  %v5665_v21 = vcombine.high %v658_v19, %v658_v19  ;;  %v5677_v28 = vcombine.low %v662_v18, %v662_v18  ;;  %v5679_v29 = vcombine.high %v662_v18, %v662_v18 }
 0x26a   : > { %824 = vrot.lane.b32.xlu0 %v5665_v21, %s5209_s29  ;;  %776 = vrot.lane.b32.xlu1 %v5663_v20, %s5209_s29 }
 0x26b   : > { %v680_v22 = vpop.permute.xlu1 %679  ;;  %v660_v23 = vpop.permute.xlu0 %659 }
 0x26c   : > { %v5669_v24 = vcombine.low %v660_v23, %v660_v23  ;;  %v5671_v25 = vcombine.high %v660_v23, %v660_v23  ;;  %v686_v26 = vsel %vm681_vm3, %v680_v22, 0 }
 0x26d   : > { %4459 = vmatpush3.bf16.xpose.msra.mxu1 %v686_v26 }
 0x26e   : > { %920 = vrot.lane.b32.xlu0 %v5671_v25, %s5209_s29  ;;  %872 = vrot.lane.b32.xlu1 %v5669_v24, %s5209_s29 }
 0x26f   : > { %v729_v27 = vpop.permute.xlu0 %728  ;;  %4470 = vmatprep.subr.bf16.mxu1 %v5205_v3 }
 0x270   : > { %v734_v30 = vsel %vm681_vm3, %v729_v27, 0 }
 0x271   : > { %4465 = vmatpush3.bf16.xpose.msra.mxu0 %v734_v30 }
 0x272   : > { %1016 = vrot.lane.b32.xlu0 %v5679_v29, %s5209_s29  ;;  %968 = vrot.lane.b32.xlu1 %v5677_v28, %s5209_s29 }
 0x273   : > { %4476 = vmatprep.subr.bf16.mxu0 %v5205_v3 }
 0x274   : > { %4461 = vmatmul.mubr.msk.bf16.vlgmr.msra.gmra.mrb[0].mxu1 %vm681_vm3, %v4230_v16 }
 0x275   : > { %4472 = vmatprep.mubr.msk.bf16.mxu1 %vm5206_vm1, %v5205_v3 }
 0x276   : > { %1160 = vrot.lane.b32.xlu0 %v4230_v16, %s5211_s11  ;;  %1209 = vrot.lane.b32.xlu1 %v4231_v17, %s5211_s11 }
 0x278   : > { %4467 = vmatmul.mubr.msk.bf16.vlgmr.msra.gmra.mrb[4].mxu0 %vm681_vm3, %v4231_v17 }
 0x279   : > { %4478 = vmatprep.mubr.msk.bf16.mxu0 %vm5206_vm1, %v5205_v3 }
 0x2dc   : > { %v777_v31 = vpop.permute.xlu1 %776  ;;  %v825_v32 = vpop.permute.xlu0 %824 }
 0x2dd   : > { %v782_v33 = vsel %vm681_vm3, %v777_v31, 0  ;;  %v830_v34 = vsel %vm681_vm3, %v825_v32, 0 }
 0x2de   : > { %4471 = vmatpush3.bf16.xpose.msra.mxu1 %v782_v33  ;;  %4477 = vmatpush3.bf16.xpose.msra.mxu0 %v830_v34 }
 0x2df   : > { %4482 = vmatprep.subr.bf16.mxu1 %v5205_v3  ;;  %4488 = vmatprep.subr.bf16.mxu0 %v5205_v3 }
 0x2e0   : > { %v873_v35 = vpop.permute.xlu1 %872  ;;  %v921_v36 = vpop.permute.xlu0 %920 }
 0x2e1   : > { %v878_v37 = vsel %vm681_vm3, %v873_v35, 0  ;;  %v926_v38 = vsel %vm681_vm3, %v921_v36, 0 }
 0x2e4   : > { %v969_v39 = vpop.permute.xlu1 %968  ;;  %v1017_v40 = vpop.permute.xlu0 %1016 }
 0x2e5   : > { %4473 = vmatmul.mubr.msk.bf16.vlgmr.msra.gmra.mrb[4].mxu1 %vm681_vm3, %v5663_v20  ;;  %4479 = vmatmul.mubr.msk.bf16.vlgmr.msra.gmra.mrb[8].mxu0 %vm681_vm3, %v5665_v21  ;;  %v974_v41 = vsel %vm681_vm3, %v969_v39, 0  ;;  %v1022_v42 = vsel %vm681_vm3, %v1017_v40, 0 }
 0x2e6   : > { %4483 = vmatpush3.bf16.xpose.msra.mxu1 %v878_v37  ;;  %4489 = vmatpush3.bf16.xpose.msra.mxu0 %v926_v38 }
 0x2e7   : > { %4484 = vmatprep.mubr.msk.bf16.mxu1 %vm5206_vm1, %v5205_v3  ;;  %4490 = vmatprep.mubr.msk.bf16.mxu0 %vm5206_vm1, %v5205_v3 }
 0x2e8   : > { %4494 = vmatprep.subr.bf16.mxu1 %v5205_v3  ;;  %4500 = vmatprep.subr.bf16.mxu0 %v5205_v3  ;;  %v1210_v43 = vpop.permute.xlu1 %1209  ;;  %v1161_v44 = vpop.permute.xlu0 %1160 }
 0x2e9   : > { %v1215_v45 = vsel %vm1165_vm4, %v1210_v43, 0  ;;  %v1167_v46 = vsel %vm1165_vm4, %v1161_v44, 0 }
 0x2ed   : > { %4485 = vmatmul.mubr.msk.bf16.vlgmr.msra.gmra.mrb[8].mxu1 %vm681_vm3, %v5669_v24  ;;  %4491 = vmatmul.mubr.msk.bf16.vlgmr.msra.gmra.mrb[12].mxu0 %vm681_vm3, %v5671_v25 }
 0x2ee   : > { %4495 = vmatpush3.bf16.xpose.msra.mxu1 %v974_v41  ;;  %4501 = vmatpush3.bf16.xpose.msra.mxu0 %v1022_v42 }
 0x2ef   : > { %4496 = vmatprep.mubr.msk.bf16.mxu1 %vm5206_vm1, %v5205_v3  ;;  %4502 = vmatprep.mubr.msk.bf16.mxu0 %vm5206_vm1, %v5205_v3 }
 0x2f0   : > { %4506 = vmatprep.subr.bf16.mxu1 %v5205_v3  ;;  %4512 = vmatprep.subr.bf16.mxu0 %v5205_v3 }
 0x2f5   : > { %4497 = vmatmul.mubr.msk.bf16.vlgmr.msra.gmra.mrb[12].mxu1 %vm681_vm3, %v5677_v28  ;;  %4503 = vmatmul.mubr.msk.bf16.vlgmr.msra.gmra.mrb[16].mxu0 %vm681_vm3, %v5679_v29 }
 0x2f6   : > { %4507 = vmatpush3.bf16.msra.mxu1 %v1167_v46  ;;  %4513 = vmatpush3.bf16.msra.mxu0 %v1215_v45 }
 0x2f7   : > { %4508 = vmatprep.mubr.msk.bf16.mxu1 %vm5206_vm1, %v5205_v3  ;;  %4514 = vmatprep.mubr.msk.bf16.mxu0 %vm5206_vm1, %v5205_v3 }
 0x2f8   : > { %4518 = vmatprep.subr.bf16.mxu1 %v5205_v3  ;;  %4524 = vmatprep.subr.bf16.mxu0 %v5205_v3 }
 0x347   : > { %v722_v47 = vpop.f32.mrb[0].mxu1 }
 0x348   : > { %v4462_v48 = vpop.f32.mrb[1].mxu1  ;;  %v1064_v49 = vsel %vm681_vm3, %v722_v47, -inf }
 0x349   : > { %v725_v50 = vpop.f32.mrb[2].mxu1  ;;  %1065 = vmax.xlane.f32.xlu1 %v1064_v49 }
 0x34a   : > { %v4463_v51 = vpop.f32.mrb[3].mxu1 }
 0x34b   : > { %v770_v52 = vpop.f32.mrb[4].mxu0 }
 0x34c   : > { %v4468_v53 = vpop.f32.mrb[5].mxu0  ;;  %v1067_v54 = vsel %vm681_vm3, %v770_v52, -inf }
 0x34d   : > { %1068 = vmax.xlane.f32.xlu0 %v1067_v54  ;;  %v773_v55 = vpop.f32.mrb[6].mxu0 }
 0x34e   : > { %v4469_v56 = vpop.f32.mrb[7].mxu0 }
 0x3b8   : > { %v818_v57 = vpop.f32.mrb[4].mxu1  ;;  %v866_v58 = vpop.f32.mrb[8].mxu0 }
 0x3b9   : > { %v4474_v59 = vpop.f32.mrb[5].mxu1  ;;  %v4480_v60 = vpop.f32.mrb[9].mxu0  ;;  %v1070_v61 = vsel %vm681_vm3, %v818_v57, -inf  ;;  %v1073_v62 = vsel %vm681_vm3, %v866_v58, -inf }
 0x3ba   : > { %v821_v63 = vpop.f32.mrb[6].mxu1  ;;  %1071 = vmax.xlane.f32.xlu0 %v1070_v61  ;;  %1074 = vmax.xlane.f32.xlu1 %v1073_v62  ;;  %v869_v0 = vpop.f32.mrb[10].mxu0 }
 0x3bb   : > { %v4475_v1 = vpop.f32.mrb[7].mxu1  ;;  %v4481_v2 = vpop.f32.mrb[11].mxu0 }
 0x3c0   : > { %v5737_v4 = vpop.f32.mrb[8].mxu1  ;;  %v962_v5 = vpop.f32.mrb[12].mxu0 }
 0x3c1   : > { %v4486_v6 = vpop.f32.mrb[9].mxu1  ;;  %v4492_v7 = vpop.f32.mrb[13].mxu0  ;;  %v1076_v8 = vsel %vm681_vm3, %v5737_v4, -inf  ;;  %v1079_v9 = vsel %vm681_vm3, %v962_v5, -inf }
 0x3c2   : > { %v917_v10 = vpop.f32.mrb[10].mxu1  ;;  %1077 = vmax.xlane.f32.xlu0 %v1076_v8  ;;  %1080 = vmax.xlane.f32.xlu1 %v1079_v9  ;;  %v965_v11 = vpop.f32.mrb[14].mxu0 }
 0x3c3   : > { %v4487_v12 = vpop.f32.mrb[11].mxu1  ;;  %v4493_v13 = vpop.f32.mrb[15].mxu0 }
 0x3c8   : > { %v5742_v14 = vpop.f32.mrb[12].mxu1  ;;  %v1058_v15 = vpop.f32.mrb[16].mxu0 }
 0x3c9   : > { %v4498_v16 = vpop.f32.mrb[13].mxu1  ;;  %v4504_v17 = vpop.f32.mrb[17].mxu0  ;;  %v1082_v18 = vsel %vm681_vm3, %v5742_v14, -inf  ;;  %v1085_v19 = vsel %vm681_vm3, %v1058_v15, -inf }
 0x3ca   : > { %v1013_v22 = vpop.f32.mrb[14].mxu1  ;;  %1083 = vmax.xlane.f32.xlu0 %v1082_v18  ;;  %1086 = vmax.xlane.f32.xlu1 %v1085_v19  ;;  %v1061_v23 = vpop.f32.mrb[18].mxu0 }
 0x3cb   : > { %v4499_v26 = vpop.f32.mrb[15].mxu1  ;;  %v4505_v27 = vpop.f32.mrb[19].mxu0 }
 0x3d6   : > { %v1066_v30 = vpop.xlane.xlu1 %1065 }
 0x3d7   : > { %v1088_v32 = vsub.f32 %v722_v47, %v1066_v30 }
 0x3d9   : > { %v1096_v34 = vmul.f32 1.442695, %v1088_v32 }
 0x3da   : > { %v1069_v31 = vpop.xlane.xlu0 %1068 }
 0x3db   : > { %1257 = vrot.lane.b32.xlu1 %v5663_v20, %s5211_s11  ;;  %v1089_v33 = vsub.f32 %v770_v52, %v1069_v31  ;;  %4813 = vpow2.f32 %v1096_v34 }
 0x3dd   : > { %v1098_v35 = vmul.f32 1.442695, %v1089_v33 }
 0x3df   : > { %4815 = vpow2.f32 %v1098_v35 }
 0x3e0   : > { %1305 = vrot.lane.b32.xlu0 %v5665_v21, %s5211_s11 }
 0x3e5   : > { %v4814_v36 = vpop.eup %4813 }
 0x3e6   : > { %v1112_v38 = vsel %vm681_vm3, %v4814_v36, 0.0 }
 0x3e9   : > { %v4816_v37 = vpop.eup %4815 }
 0x3ea   : > { %v1115_v39 = vsel %vm681_vm3, %v4816_v37, 0.0 }
 0x3ff   : > { %1113 = vadd.xlane.f32.xlu0 %v1112_v38  ;;  %1116 = vadd.xlane.f32.xlu1 %v1115_v39 }
 0x410   : > { %1353 = vrot.lane.b32.xlu1 %v5669_v24, %s5211_s11 }
 0x447   : > { %v1072_v20 = vpop.xlane.xlu0 %1071  ;;  %v1075_v21 = vpop.xlane.xlu1 %1074 }
 0x448   : > { %v1090_v40 = vsub.f32 %v818_v57, %v1072_v20  ;;  %v1091_v41 = vsub.f32 %v866_v58, %v1075_v21 }
 0x44a   : > { %v1100_v42 = vmul.f32 1.442695, %v1090_v40  ;;  %v1102_v43 = vmul.f32 1.442695, %v1091_v41 }
 0x44c   : > { %4817 = vpow2.f32 %v1100_v42 }
 0x44d   : > { %4819 = vpow2.f32 %v1102_v43 }
 0x44f   : > { %v1081_v44 = vpop.xlane.xlu1 %1080  ;;  %v1078_v57 = vpop.xlane.xlu0 %1077 }
 0x450   : > { %v1093_v45 = vsub.f32 %v962_v5, %v1081_v44  ;;  %v1092_v58 = vsub.f32 %v5737_v4, %v1078_v57 }
 0x452   : > { %v1106_v46 = vmul.f32 1.442695, %v1093_v45  ;;  %v1104_v60 = vmul.f32 1.442695, %v1092_v58 }
 0x454   : > { %4821 = vpow2.f32 %v1106_v46 }
 0x456   : > { %v5755_v47 = vpop.eup %4817 }
 0x457   : > { %v5757_v48 = vpop.eup %4819  ;;  %v1087_v49 = vpop.xlane.xlu1 %1086  ;;  %v1118_v24 = vsel %vm681_vm3, %v5755_v47, 0.0 }
 0x458   : > { %v1095_v50 = vsub.f32 %v1058_v15, %v1087_v49  ;;  %1119 = vadd.xlane.f32.xlu0 %v1118_v24  ;;  %v1121_v51 = vsel %vm681_vm3, %v5757_v48, 0.0  ;;  %v1084_v59 = vpop.xlane.xlu0 %1083 }
 0x459   : > { %1122 = vadd.xlane.f32.xlu1 %v1121_v51  ;;  %v1094_v61 = vsub.f32 %v5742_v14, %v1084_v59 }
 0x45a   : > { %v1110_v52 = vmul.f32 1.442695, %v1095_v50 }
 0x45b   : > { %v1108_v62 = vmul.f32 1.442695, %v1094_v61  ;;  %v1258_v0 = vpop.permute.xlu1 %1257 }
 0x45c   : > { %4823 = vpow2.f32 %v1110_v52  ;;  %v1306_v63 = vpop.permute.xlu0 %1305  ;;  %v1263_v12 = vsel %vm1165_vm4, %v1258_v0, 0 }
 0x45d   : > { %4825 = vpow2.f32 %v1104_v60  ;;  %v1311_v13 = vsel %vm1165_vm4, %v1306_v63, 0 }
 0x45e   : > { %v5763_v53 = vpop.eup %4821  ;;  %4827 = vpow2.f32 %v1108_v62 }
 0x45f   : > { %v1127_v54 = vsel %vm681_vm3, %v5763_v53, 0.0 }
 0x460   : > { %1128 = vadd.xlane.f32.xlu1 %v1127_v54 }
 0x466   : > { %v5767_v55 = vpop.eup %4823 }
 0x467   : > { %v1133_v56 = vsel %vm681_vm3, %v5767_v55, 0.0  ;;  %v5777_v1 = vpop.eup %4825 }
 0x468   : > { %1134 = vadd.xlane.f32.xlu1 %v1133_v56  ;;  %v5781_v4 = vpop.eup %4827 }
 0x46e   : > { %1401 = vrot.lane.b32.xlu0 %v5671_v25, %s5211_s11  ;;  %v1124_v25 = vsel %vm681_vm3, %v5777_v1, 0.0 }
 0x479   : > { %1449 = vrot.lane.b32.xlu1 %v5677_v28, %s5211_s11  ;;  %v1130_v28 = vsel %vm681_vm3, %v5781_v4, 0.0 }
 0x48c   : > { %v1114_v2 = vpop.xlane.xlu0 %1113  ;;  %v1117_v5 = vpop.xlane.xlu1 %1116 }
 0x48d   : > { %4829 = vrcp.f32 %v1114_v2  ;;  %1125 = vadd.xlane.f32.xlu0 %v1124_v25 }
 0x48e   : > { %4831 = vrcp.f32 %v1117_v5 }
 0x490   : > { %v1354_v14 = vpop.permute.xlu1 %1353 }
 0x491   : > { %1131 = vadd.xlane.f32.xlu0 %v1130_v28  ;;  %v1359_v31 = vsel %vm1165_vm4, %v1354_v14, 0  ;;  %v4683_v28 = vld [vmem:[%s479_s14] sm:$0xff]  }
 0x497   : > { %v4830_v6 = vpop.eup %4829 }
 0x498   : > { %v4832_v7 = vpop.eup %4831  ;;  %v1144_v8 = vmul.f32 %v4830_v6, %v4814_v36  ;;  %v4684_v6 = vld [vmem:[%s479_s14 + $0x8] sm:$0xff]  }
 0x499   : > { %v1145_v9 = vmul.f32 %v4832_v7, %v4816_v37 }
 0x49a   : > { %v1152_v10 = vpack.c.bf16 %v1144_v8, %v1144_v8 }
 0x49b   : > { %v1153_v11 = vpack.c.bf16 %v1145_v9, %v1145_v9 }
 0x49c   : > { %4509 = vmatmul.mubr.msk.bf16.vlgmr.msra.gmra.mrb[16].mxu1 %vm681_vm3, %v1152_v10 }
 0x49d   : > { %4515 = vmatmul.mubr.msk.bf16.vlgmr.msra.gmra.mrb[20].mxu0 %vm681_vm3, %v1153_v11  ;;  %4519 = vmatpush3.bf16.msra.mxu1 %v1263_v12 }
 0x49e   : > { %4525 = vmatpush3.bf16.msra.mxu0 %v1311_v13  ;;  %4520 = vmatprep.mubr.msk.bf16.mxu1 %vm5206_vm1, %v5205_v3 }
 0x49f   : > { %4526 = vmatprep.mubr.msk.bf16.mxu0 %vm5206_vm1, %v5205_v3  ;;  %4530 = vmatprep.subr.bf16.mxu1 %v5205_v3 }
 0x4a0   : > { %4536 = vmatprep.subr.bf16.mxu0 %v5205_v3 }
 0x4a7   : > { %1497 = vrot.lane.b32.xlu0 %v5679_v29, %s5211_s11 }
 0x4e5   : > { %v1120_v15 = vpop.xlane.xlu0 %1119 }
 0x4e6   : > { %4833 = vrcp.f32 %v1120_v15  ;;  %v1123_v16 = vpop.xlane.xlu1 %1122 }
 0x4e7   : > { %4835 = vrcp.f32 %v1123_v16 }
 0x4e9   : > { %v1402_v26 = vpop.permute.xlu0 %1401 }
 0x4ea   : > { %v1407_v29 = vsel %vm1165_vm4, %v1402_v26, 0 }
 0x4ed   : > { %v1129_v17 = vpop.xlane.xlu1 %1128 }
 0x4ee   : > { %4837 = vrcp.f32 %v1129_v17 }
 0x4f0   : > { %v4834_v18 = vpop.eup %4833 }
 0x4f1   : > { %v4836_v19 = vpop.eup %4835  ;;  %v1146_v22 = vmul.f32 %v4834_v18, %v5755_v47 }
 0x4f2   : > { %v1147_v23 = vmul.f32 %v4836_v19, %v5757_v48 }
 0x4f3   : > { %v1154_v27 = vpack.c.bf16 %v1146_v22, %v1146_v22 }
 0x4f4   : > { %v1155_v30 = vpack.c.bf16 %v1147_v23, %v1147_v23 }
 0x4f5   : > { %4521 = vmatmul.mubr.msk.bf16.vlgmr.msra.gmra.mrb[20].mxu1 %vm681_vm3, %v1154_v27  ;;  %v1135_v35 = vpop.xlane.xlu1 %1134 }
 0x4f6   : > { %4527 = vmatmul.mubr.msk.bf16.vlgmr.msra.gmra.mrb[24].mxu0 %vm681_vm3, %v1155_v30  ;;  %4531 = vmatpush3.bf16.msra.mxu1 %v1359_v31  ;;  %4839 = vrcp.f32 %v1135_v35 }
 0x4f7   : > { %4537 = vmatpush3.bf16.msra.mxu0 %v1407_v29  ;;  %4538 = vmatprep.mubr.msk.bf16.mxu0 %vm5206_vm1, %v5205_v3  ;;  %v1592_v29 = vlaneseq }
 0x4f8   : > { %4548 = vmatprep.subr.bf16.mxu0 %v5205_v3  ;;  %4532 = vmatprep.mubr.msk.bf16.mxu1 %vm5206_vm1, %v5205_v3  ;;  %v4838_v32 = vpop.eup %4837 }
 0x4f9   : > { %4542 = vmatprep.subr.bf16.mxu1 %v5205_v3  ;;  %v1149_v33 = vmul.f32 %v4838_v32, %v5763_v53  ;;  %v1450_v43 = vpop.permute.xlu1 %1449  ;;  %v5833_v32 = vshrl.u32 %v1592_v29, 7 }
 0x4fa   : > { %v1455_v46 = vsel %vm1165_vm4, %v1450_v43, 0  ;;  %v4854_v43 = vld [vmem:[#allocation2 + $0x8] sm:$0xff] }
 0x4fb   : > { %v1157_v34 = vpack.c.bf16 %v1149_v33, %v1149_v33  ;;  %v5836_v33 = vsub.s32 0, %v5833_v32 }
 0x4fe   : > { %4539 = vmatmul.mubr.msk.bf16.vlgmr.msra.gmra.mrb[28].mxu0 %vm681_vm3, %v1157_v34  ;;  %v5839_v34 = vld [vmem:[%s5639_s18] sm:$0x3f] }
 0x4ff   : > { %4550 = vmatprep.mubr.msk.bf16.mxu0 %vm5206_vm1, %v5205_v3  ;;  %v1595_v35 = vrot.slane %v5839_v34, %v5836_v33 }
 0x500   : > { %v4840_v37 = vpop.eup %4839 }
 0x501   : > { %v1151_v39 = vmul.f32 %v4840_v37, %v5767_v55 }
 0x503   : > { %v1159_v41 = vpack.c.bf16 %v1151_v39, %v1151_v39 }
 0x51a   : > { %v1126_v36 = vpop.xlane.xlu0 %1125 }
 0x51b   : > { %4841 = vrcp.f32 %v1126_v36 }
 0x51e   : > { %v1132_v38 = vpop.xlane.xlu0 %1131 }
 0x51f   : > { %4843 = vrcp.f32 %v1132_v38 }
 0x522   : > { %v1498_v20 = vpop.permute.xlu0 %1497 }
 0x523   : > { %v1503_v21 = vsel %vm1165_vm4, %v1498_v20, 0 }
 0x524   : > { %4549 = vmatpush3.bf16.msra.mxu0 %v1503_v21 }
 0x525   : > { %v4842_v40 = vpop.eup %4841 }
 0x526   : > { %v1148_v42 = vmul.f32 %v4842_v40, %v5777_v1  ;;  %v4853_v40 = vld [vmem:[#allocation2] sm:$0xff] }
 0x527   : > { %4551 = vmatmul.mubr.msk.bf16.vlgmr.msra.gmra.mrb[32].mxu0 %vm681_vm3, %v1159_v41 }
 0x528   : > { %v1156_v44 = vpack.c.bf16 %v1148_v42, %v1148_v42 }
 0x529   : > { %v4844_v45 = vpop.eup %4843 }
 0x52a   : > { %4533 = vmatmul.mubr.msk.bf16.vlgmr.msra.gmra.mrb[24].mxu1 %vm681_vm3, %v1156_v44  ;;  %v1150_v47 = vmul.f32 %v4844_v45, %v5781_v4 }
 0x52b   : > { %4543 = vmatpush3.bf16.msra.mxu1 %v1455_v46  ;;  %4544 = vmatprep.mubr.msk.bf16.mxu1 %vm5206_vm1, %v5205_v3 }
 0x52c   : > { %4554 = vmatprep.subr.bf16.mxu1 %v5205_v3  ;;  %v1158_v48 = vpack.c.bf16 %v1150_v47, %v1150_v47 }
 0x532   : > { %4545 = vmatmul.mubr.msk.bf16.vlgmr.msra.gmra.mrb[28].mxu1 %vm681_vm3, %v1158_v48 }
 0x533   : > { %4558 = vmatprep.mubr.msk.bf16.mxu1 %vm5206_vm1, %v5205_v3  ;;  %4555 = vmatpush3.bf16.msra.mxu1 %v4683_v28 }
 0x534   : > { %4556 = vmatprep.subr.bf16.mxu1 %v5205_v3 }
 0x537   : > { %4557 = vmatpush3.bf16.msra.mxu1 %v4684_v6  ;;  %v1695_v6 = vld [vmem:[%s5627_s17 + $0x10] sm:$0xff] }
 0x56f   : > { %v1203_v49 = vpop.f32.mrb[16].mxu1 }
 0x570   : > { %v1251_v24 = vpop.f32.mrb[20].mxu0  ;;  %v4510_v50 = vpop.f32.mrb[17].mxu1 }
 0x571   : > { %v4232_v51 = vpack.c.bf16 %v1251_v24, %v1203_v49  ;;  %v4516_v52 = vpop.f32.mrb[21].mxu0  ;;  %v1206_v53 = vpop.f32.mrb[18].mxu1 }
 0x572   : > { %v1254_v54 = vpop.f32.mrb[22].mxu0  ;;  %v4511_v55 = vpop.f32.mrb[19].mxu1 }
 0x573   : > { %v4517_v56 = vpop.f32.mrb[23].mxu0  ;;  %v1693_v55 = vld [vmem:[%s5627_s17] sm:$0xff] }
 0x574   : > { %v1701_v56 = vld [vmem:[%s5627_s17 + $0x40] sm:$0xff] }
 0x5c8   : > { %v1299_v57 = vpop.f32.mrb[20].mxu1 }
 0x5c9   : > { %v1347_v58 = vpop.f32.mrb[24].mxu0  ;;  %v4522_v59 = vpop.f32.mrb[21].mxu1 }
 0x5ca   : > { %v4233_v60 = vpack.c.bf16 %v1347_v58, %v1299_v57  ;;  %v4528_v61 = vpop.f32.mrb[25].mxu0  ;;  %v1302_v62 = vpop.f32.mrb[22].mxu1  ;;  %v1694_v57 = vld [vmem:[%s5627_s17 + $0x8] sm:$0xff]  ;;  %v4053_v58 = vcombine.high %v1693_v55, %v1701_v56 }
 0x5cb   : > { %v1350_v63 = vpop.f32.mrb[26].mxu0  ;;  %v4523_v0 = vpop.f32.mrb[23].mxu1  ;;  %v1702_v59 = vld [vmem:[%s5627_s17 + $0x48] sm:$0xff] }
 0x5cc   : > { %1563 = vrot.lane.b32.xlu1 %v4233_v60, %s5212_s22  ;;  %v4529_v1 = vpop.f32.mrb[27].mxu0  ;;  %v4052_v60 = vcombine.low %v1693_v55, %v1701_v56  ;;  %v4054_v61 = vcombine.low %v1694_v57, %v1702_v59  ;;  %v4055_v62 = vcombine.high %v1694_v57, %v1702_v59  ;;  %1972 = vmatprep.subr.bf16.mxu0 %v4053_v58  ;;  %v1709_v63 = vld [vmem:[%s5627_s17 + $0x80] sm:$0xff]  ;;  %v1699_v59 = vld [vmem:[%s5627_s17 + $0x30] sm:$0xff] }
 0x5cd   : > { %v1717_v0 = vld [vmem:[%s5627_s17 + $0xc0] sm:$0xff]  ;;  %v1710_v1 = vld [vmem:[%s5627_s17 + $0x88] sm:$0xff] }
 0x5ce   : > { %2015 = vmatprep.subr.bf16.mxu1 %v4055_v62  ;;  %1973 = vmatpush1.bf16.msra.mxu0 %v4052_v60  ;;  %v1707_v60 = vld [vmem:[%s5627_s17 + $0x70] sm:$0xff]  ;;  %v1708_v62 = vld [vmem:[%s5627_s17 + $0x78] sm:$0xff] }
 0x5d1   : > { %v1443_v2 = vpop.f32.mrb[28].mxu0 }
 0x5d2   : > { %v4540_v5 = vpop.f32.mrb[29].mxu0 }
 0x5d3   : > { %v1446_v25 = vpop.f32.mrb[30].mxu0  ;;  %v1718_v5 = vld [vmem:[%s5627_s17 + $0xc8] sm:$0xff] }
 0x5d4   : > { %v4541_v4 = vpop.f32.mrb[31].mxu0  ;;  %v4068_v25 = vcombine.low %v1709_v63, %v1717_v0  ;;  %v4071_v28 = vcombine.high %v1710_v1, %v1718_v5 }
 0x5d5   : > { %v4070_v4 = vcombine.low %v1710_v1, %v1718_v5  ;;  %v4065_v1 = vcombine.high %v1699_v59, %v1707_v60  ;;  %v1715_v5 = vld [vmem:[%s5627_s17 + $0xb0] sm:$0xff] }
 0x5fa   : > { %v1539_v7 = vpop.f32.mrb[32].mxu0 }
 0x5fb   : > { %v4552_v8 = vpop.f32.mrb[33].mxu0 }
 0x5fc   : > { %v1542_v9 = vpop.f32.mrb[34].mxu0  ;;  %v1696_v8 = vld [vmem:[%s5627_s17 + $0x18] sm:$0xff] }
 0x5fd   : > { %v1395_v10 = vpop.f32.mrb[24].mxu1  ;;  %v4553_v11 = vpop.f32.mrb[35].mxu0  ;;  %v5215_v9 = vmov 0  }
 0x5fe   : > { %v4234_v12 = vpack.c.bf16 %v1443_v2, %v1395_v10  ;;  %v4534_v13 = vpop.f32.mrb[25].mxu1  ;;  %v4069_v2 = vcombine.high %v1709_v63, %v1717_v0  ;;  %2004 = vmatprep.mubr.bf16.mxu0 %v5215_v9 }
 0x5ff   : > { %v1398_v14 = vpop.f32.mrb[26].mxu1 }
 0x600   : > { %v4535_v15 = vpop.f32.mrb[27].mxu1  ;;  %1570 = vrot.lane.b32.xlu0 %v4234_v12, %s5213_s23  ;;  %1974 = vmatprep.subr.bf16.mxu0 %v4069_v2  ;;  %v1704_v12 = vld [vmem:[%s5627_s17 + $0x58] sm:$0xff] }
 0x601   : > { %1975 = vmatpush1.bf16.msra.mxu0 %v4068_v25  ;;  %v4058_v13 = vcombine.low %v1696_v8, %v1704_v12  ;;  %v4059_v14 = vcombine.high %v1696_v8, %v1704_v12  ;;  %v1723_v25 = vld [vmem:[%s5627_s17 + $0xf0] sm:$0xff] }
 0x602   : > { %v4081_v8 = vcombine.high %v1715_v5, %v1723_v25 }
 0x605   : > { %v1491_v16 = vpop.f32.mrb[28].mxu1 }
 0x606   : > { %v4235_v17 = vpack.c.bf16 %v1539_v7, %v1491_v16  ;;  %v4546_v18 = vpop.f32.mrb[29].mxu1  ;;  %v1703_v7 = vld [vmem:[%s5627_s17 + $0x50] sm:$0xff] }
 0x607   : > { %v1494_v19 = vpop.f32.mrb[30].mxu1  ;;  %v4056_v10 = vcombine.low %v1695_v6, %v1703_v7  ;;  %v4057_v11 = vcombine.high %v1695_v6, %v1703_v7  ;;  %v4064_v6 = vcombine.low %v1699_v59, %v1707_v60 }
 0x608   : > { %v4547_v22 = vpop.f32.mrb[31].mxu1  ;;  %1577 = vrot.lane.b32.xlu1 %v4235_v17, %s5214_s19 }
 0x609   : > { %2058 = vmatprep.subr.bf16.mxu0 %v4057_v11  ;;  %v4080_v11 = vcombine.low %v1715_v5, %v1723_v25 }
 0x63e   : > { %v1564_v3 = vpop.permute.xlu1 %1563 }
 0x63f   : > { %v1581_v26 = vsel %vm681_vm3, %v4232_v51, %v1564_v3  ;;  %v5862_v3 = vsub.s32 1, %v5833_v32 }
 0x672   : > { %v1571_v23 = vpop.permute.xlu0 %1570 }
 0x673   : > { %v1584_v27 = vsel %vm1582_vm5, %v1581_v26, %v1571_v23  ;;  %v1683_v26 = vrot.slane %v5839_v34, %v5862_v3 }
 0x67a   : > { %v1578_v30 = vpop.permute.xlu1 %1577 }
 0x67b   : > { %v1587_v31 = vsel %vm1585_vm6, %v1584_v27, %v1578_v30  ;;  %v5867_v27 = vsub.s32 2, %v5833_v32 }
 0x67c   : > { %4559 = vmatmul.mubr.msk.bf16.vlgmr.msra.gmra.mrb[32].mxu1 %vm610_vm2, %v1587_v31 }
 0x67d   : > { %2016 = vmatpush1.bf16.msra.mxu1 %v4054_v61  ;;  %2047 = vmatprep.mubr.bf16.mxu1 %v5215_v9  ;;  %v1689_v29 = vrot.slane %v5839_v34, %v5867_v27  ;;  %v1697_v34 = vld [vmem:[%s5627_s17 + $0x20] sm:$0xff]  ;;  %v1700_v61 = vld [vmem:[%s5627_s17 + $0x38] sm:$0xff] }
 0x67e   : > { %2017 = vmatprep.subr.bf16.mxu1 %v4071_v28  ;;  %v4067_v2 = vcombine.high %v1700_v61, %v1708_v62  ;;  %v1724_v28 = vld [vmem:[%s5627_s17 + $0xf8] sm:$0xff]  ;;  %v4066_v7 = vcombine.low %v1700_v61, %v1708_v62  ;;  %v5973_v62 = vsub.s32 4, %v5833_v32 }
 0x681   : > { %2018 = vmatpush1.bf16.msra.mxu1 %v4070_v4  ;;  %v1716_v4 = vld [vmem:[%s5627_s17 + $0xb8] sm:$0xff] }
 0x682   : > { %2101 = vmatprep.subr.bf16.mxu1 %v4059_v14  ;;  %v4082_v12 = vcombine.low %v1716_v4, %v1724_v28  ;;  %v4686_v14 = vld [vmem:[%s5636_s20 + $0xc0] sm:$0xff]  }
 0x74f   : > { %v1644_v36 = vpop.f32.mrb[32].mxu1 }
 0x750   : > { %v1645_v37 = vadd.f32 %v1644_v36, %v1595_v35  ;;  %v4560_v38 = vpop.f32.mrb[33].mxu1 }
 0x751   : > { %v1647_v39 = vpop.f32.mrb[34].mxu1  ;;  %v1711_v38 = vld [vmem:[%s5627_s17 + $0x90] sm:$0xff] }
 0x752   : > { %v1648_v20 = vadd.f32 %v1647_v39, %v1595_v35  ;;  %v4561_v21 = vpop.f32.mrb[35].mxu1  ;;  %v1651_v41 = vadd.f32 %v4853_v40, %v1645_v37  ;;  %v1719_v39 = vld [vmem:[%s5627_s17 + $0xd0] sm:$0xff] }
 0x753   : > { %v1720_v21 = vld [vmem:[%s5627_s17 + $0xd8] sm:$0xff] }
 0x754   : > { %v1653_v42 = vsel %vm610_vm2, %v1651_v41, 0.0  ;;  %v1652_v44 = vadd.f32 %v4854_v43, %v1648_v20  ;;  %v1712_v20 = vld [vmem:[%s5627_s17 + $0x98] sm:$0xff]  ;;  %v4073_v43 = vcombine.high %v1711_v38, %v1719_v39 }
 0x755   : > { %1654 = vadd.xlane.f32.xlu0 %v1653_v42 }
 0x756   : > { %v1656_v45 = vsel %vm610_vm2, %v1652_v44, 0.0 }
 0x757   : > { %1657 = vadd.xlane.f32.xlu1 %v1656_v45  ;;  %v1705_v45 = vld [vmem:[%s5627_s17 + $0x60] sm:$0xff] }
 0x758   : > { %v4060_v55 = vcombine.low %v1697_v34, %v1705_v45 }
 0x7e2   : > { %v1655_v46 = vpop.xlane.xlu0 %1654 }
 0x7e3   : > { %v1660_v47 = vmul.f32 0.03125, %v1655_v46  ;;  %v1698_v46 = vld [vmem:[%s5627_s17 + $0x28] sm:$0xff] }
 0x7e4   : > { %v1658_v48 = vpop.xlane.xlu1 %1657 }
 0x7e5   : > { %v1662_v49 = vsub.f32 %v1651_v41, %v1660_v47  ;;  %v1661_v24 = vmul.f32 0.03125, %v1658_v48  ;;  %v1706_v47 = vld [vmem:[%s5627_s17 + $0x68] sm:$0xff]  ;;  %v4072_v48 = vcombine.low %v1711_v38, %v1719_v39  ;;  %v4702_v38 = vld [vmem:[%s5636_s20 + $0xe0] sm:$0xff]  }
 0x7e6   : > { %v4062_v56 = vcombine.low %v1698_v46, %v1706_v47  ;;  %v4703_v39 = vld [vmem:[%s5636_s20 + $0x20] sm:$0xff]  }
 0x7e7   : > { %v1663_v50 = vsub.f32 %v1652_v44, %v1661_v24  ;;  %v1664_v51 = vmul.f32 %v1662_v49, %v1662_v49  ;;  %v4075_v44 = vcombine.high %v1712_v20, %v1720_v21  ;;  %v4061_v24 = vcombine.high %v1697_v34, %v1705_v45  ;;  %v4709_v34 = vld [vmem:[%s5636_s20 + $0x70] sm:$0xff]  }
 0x7e8   : > { %v4710_v45 = vld [vmem:[%s5636_s20 + $0xf0] sm:$0xff]  }
 0x7e9   : > { %v1666_v52 = vsel %vm610_vm2, %v1664_v51, 0.0  ;;  %v1665_v53 = vmul.f32 %v1663_v50, %v1663_v50  ;;  %v1713_v51 = vld [vmem:[%s5627_s17 + $0xa0] sm:$0xff] }
 0x7ea   : > { %1667 = vadd.xlane.f32.xlu0 %v1666_v52  ;;  %v1721_v52 = vld [vmem:[%s5627_s17 + $0xe0] sm:$0xff] }
 0x7eb   : > { %v1669_v54 = vsel %vm610_vm2, %v1665_v53, 0.0  ;;  %v1714_v53 = vld [vmem:[%s5627_s17 + $0xa8] sm:$0xff]  ;;  %v4077_v57 = vcombine.high %v1713_v51, %v1721_v52  ;;  %v4076_v63 = vcombine.low %v1713_v51, %v1721_v52  ;;  %v4717_v51 = vld [vmem:[%s5636_s20 + $0x140] sm:$0xff]  }
 0x7ec   : > { %v4718_v52 = vld [vmem:[%s5636_s20 + $0x1c0] sm:$0xff]  }
 0x7ee   : > { %1670 = vadd.xlane.f32.xlu0 %v1669_v54  ;;  %v1722_v54 = vld [vmem:[%s5627_s17 + $0xe8] sm:$0xff] }
 0x7ef   : > { %v4079_v58 = vcombine.high %v1714_v53, %v1722_v54  ;;  %v4078_v0 = vcombine.low %v1714_v53, %v1722_v54  ;;  %v1755_v53 = vsub.s32 6, %v5833_v32  ;;  %v5958_v54 = vld [vmem:[%s497_s26 + $0x8] sm:$0xff] }
 0x877   : > { %v1668_v15 = vpop.xlane.xlu0 %1667 }
 0x878   : > { %v1672_v16 = vmul.f32 0.03125, %v1668_v15  ;;  %v4687_v15 = vld [vmem:[%s5636_s20] sm:$0xff]  }
 0x87a   : > { %v1674_v17 = vadd.f32 1e-05, %v1672_v16  ;;  %v4688_v16 = vld [vmem:[%s5636_s20 + $0x80] sm:$0xff]  }
 0x87b   : > { %v1671_v18 = vpop.xlane.xlu0 %1670 }
 0x87c   : > { %4845 = vrsqrt.f32 %v1674_v17  ;;  %v1673_v19 = vmul.f32 0.03125, %v1671_v18  ;;  %v4689_v17 = vld [vmem:[%s5636_s20 + $0x48] sm:$0xff]  }
 0x87d   : > { %v4690_v18 = vld [vmem:[%s5636_s20 + $0xc8] sm:$0xff]  }
 0x87e   : > { %v1675_v22 = vadd.f32 1e-05, %v1673_v19  ;;  %v4692_v19 = vld [vmem:[%s5636_s20 + $0x88] sm:$0xff]  }
 0x880   : > { %4847 = vrsqrt.f32 %v1675_v22  ;;  %v4693_v22 = vld [vmem:[%s5636_s20 + $0x50] sm:$0xff]  }
 0x886   : > { %v4846_v23 = vpop.eup %4845 }
 0x887   : > { %v1678_v30 = vmul.f32 %v4846_v23, %v1662_v49  ;;  %v4074_v49 = vcombine.low %v1712_v20, %v1720_v21  ;;  %v4694_v23 = vld [vmem:[%s5636_s20 + $0xd0] sm:$0xff]   ;;  %v4704_v20 = vld [vmem:[%s5636_s20 + $0xa0] sm:$0xff]   ;;  %v4705_v21 = vld [vmem:[%s5636_s20 + $0x68] sm:$0xff]  }
 0x889   : > { %v1684_v35 = vmul.f32 %v1683_v26, %v1678_v30  ;;  %v4696_v30 = vld [vmem:[%s5636_s20 + $0x90] sm:$0xff]  }
 0x88a   : > { %v4848_v31 = vpop.eup %4847 }
 0x88b   : > { %v1679_v36 = vmul.f32 %v4848_v31, %v1663_v50  ;;  %v5875_v40 = vadd.f32 %v1689_v29, %v1684_v35  ;;  %v4063_v50 = vcombine.high %v1698_v46, %v1706_v47  ;;  %v4697_v31 = vld [vmem:[%s5636_s20 + $0x58] sm:$0xff]   ;;  %v4711_v46 = vld [vmem:[%s5636_s20 + $0x30] sm:$0xff]  }
 0x88c   : > { %v4699_v35 = vld [vmem:[%s5636_s20 + $0x18] sm:$0xff]   ;;  %v4712_v47 = vld [vmem:[%s5636_s20 + $0xb0] sm:$0xff]  }
 0x88d   : > { %v1685_v37 = vmul.f32 %v1683_v26, %v1679_v36  ;;  %v4695_v26 = vld [vmem:[%s5636_s20 + $0x10] sm:$0xff]   ;;  %v4700_v36 = vld [vmem:[%s5636_s20 + $0x98] sm:$0xff]  }
 0x88f   : > { %v5877_v41 = vadd.f32 %v1689_v29, %v1685_v37  ;;  %v4698_v29 = vld [vmem:[%s5636_s20 + $0xd8] sm:$0xff]   ;;  %v4701_v37 = vld [vmem:[%s5636_s20 + $0x60] sm:$0xff]  }
 0x891   : > { %v5881_v42 = vpack.c.bf16 %v5877_v41, %v5875_v40 }
 0x893   : > { %4084 = vmatmul.mubr.msk.bf16.vlgmr.msra.gmra.mrb[36].mxu0 %vm610_vm2, %v5881_v42  ;;  %4085 = vmatmul.mubr.msk.bf16.vlgmr.msra.gmra.mrb[36].mxu1 %vm610_vm2, %v5881_v42 }
 0x894   : > { %2059 = vmatpush1.bf16.msra.mxu0 %v4056_v10  ;;  %2102 = vmatpush1.bf16.msra.mxu1 %v4058_v13  ;;  %v4083_v10 = vcombine.high %v1716_v4, %v1724_v28  ;;  %v4685_v13 = vld [vmem:[%s5636_s20 + $0x40] sm:$0xff]  }
 0x895   : > { %2060 = vmatprep.subr.bf16.mxu0 %v4073_v43  ;;  %2103 = vmatprep.subr.bf16.mxu1 %v4075_v44  ;;  %v4707_v43 = vld [vmem:[%s5636_s20 + $0x28] sm:$0xff]  }
 0x896   : > { %2090 = vmatprep.mubr.bf16.mxu0 %v5215_v9  ;;  %2133 = vmatprep.mubr.bf16.mxu1 %v5215_v9  ;;  %v4708_v44 = vld [vmem:[%s5636_s20 + $0xa8] sm:$0xff]  }
 0x898   : > { %2061 = vmatpush1.bf16.msra.mxu0 %v4072_v48  ;;  %2104 = vmatpush1.bf16.msra.mxu1 %v4074_v49  ;;  %v4713_v48 = vld [vmem:[%s5636_s20 + $0x78] sm:$0xff]  }
 0x899   : > { %2144 = vmatprep.subr.bf16.mxu0 %v4061_v24  ;;  %2187 = vmatprep.subr.bf16.mxu1 %v4063_v50  ;;  %v4714_v49 = vld [vmem:[%s5636_s20 + $0xf8] sm:$0xff]  }
 0x89a   : > { %v4715_v24 = vld [vmem:[%s5636_s20 + $0x38] sm:$0xff]  }
 0x89b   : > { %4086 = vmatmul.mubr.msk.bf16.vlgmr.msra.gmra.mrb[40].mxu0 %vm610_vm2, %v5881_v42  ;;  %4087 = vmatmul.mubr.msk.bf16.vlgmr.msra.gmra.mrb[40].mxu1 %vm610_vm2, %v5881_v42  ;;  %v4716_v50 = vld [vmem:[%s5636_s20 + $0xb8] sm:$0xff]  }
 0x89c   : > { %2145 = vmatpush1.bf16.msra.mxu0 %v4060_v55  ;;  %2188 = vmatpush1.bf16.msra.mxu1 %v4062_v56  ;;  %v5961_v55 = vrot.slane %v5958_v54, %v1755_v53  ;;  %v1725_v56 = vld [vmem:[%s497_s26] sm:$0xff] }
 0x89d   : > { %2146 = vmatprep.subr.bf16.mxu0 %v4077_v57  ;;  %2189 = vmatprep.subr.bf16.mxu1 %v4079_v58  ;;  %v5966_v57 = vsub.s32 3, %v5833_v32  ;;  %v1732_v58 = vrot.slane %v1725_v56, %v5836_v33  ;;  %v1740_v59 = vrot.slane %v1725_v56, %v5867_v27  ;;  %v1736_v60 = vrot.slane %v1725_v56, %v5862_v3 }
 0x89e   : > { %2176 = vmatprep.mubr.bf16.mxu0 %v5215_v9  ;;  %2219 = vmatprep.mubr.bf16.mxu1 %v5215_v9 }
 0x89f   : > { %v1744_v61 = vrot.slane %v1725_v56, %v5966_v57 }
 0x8a0   : > { %2147 = vmatpush1.bf16.msra.mxu0 %v4076_v63  ;;  %2190 = vmatpush1.bf16.msra.mxu1 %v4078_v0 }
 0x8a1   : > { %2230 = vmatprep.subr.bf16.mxu0 %v4065_v1  ;;  %2273 = vmatprep.subr.bf16.mxu1 %v4067_v2  ;;  %v5976_v1 = vsub.s32 5, %v5833_v32  ;;  %v1759_v2 = vsub.s32 7, %v5833_v32 }
 0x8a3   : > { %4088 = vmatmul.mubr.msk.bf16.vlgmr.msra.gmra.mrb[44].mxu0 %vm610_vm2, %v5881_v42  ;;  %4089 = vmatmul.mubr.msk.bf16.vlgmr.msra.gmra.mrb[44].mxu1 %vm610_vm2, %v5881_v42 }
 0x8a4   : > { %2231 = vmatpush1.bf16.msra.mxu0 %v4064_v6  ;;  %2274 = vmatpush1.bf16.msra.mxu1 %v4066_v7 }
 0x8a5   : > { %2232 = vmatprep.subr.bf16.mxu0 %v4081_v8  ;;  %2275 = vmatprep.subr.bf16.mxu1 %v4083_v10 }
 0x8a6   : > { %2262 = vmatprep.mubr.bf16.mxu0 %v5215_v9  ;;  %2305 = vmatprep.mubr.bf16.mxu1 %v5215_v9  ;;  %v4691_v9 = vld [vmem:[%s5636_s20 + $0x8] sm:$0xff]  }
 0x8a8   : > { %2233 = vmatpush1.bf16.msra.mxu0 %v4080_v11  ;;  %2276 = vmatpush1.bf16.msra.mxu1 %v4082_v12 }
 0x8a9   : > { %4274 = vmatprep.subr.bf16.mxu0 %v4685_v13  ;;  %4296 = vmatprep.subr.bf16.mxu1 %v4686_v14 }
 0x8ab   : > { %4090 = vmatmul.mubr.msk.bf16.vlgmr.msra.gmra.mrb[48].mxu0 %vm610_vm2, %v5881_v42  ;;  %4091 = vmatmul.mubr.msk.bf16.vlgmr.msra.gmra.mrb[48].mxu1 %vm610_vm2, %v5881_v42  ;;  %v4706_v42 = vld [vmem:[%s5636_s20 + $0xe8] sm:$0xff]  }
 0x8ac   : > { %4275 = vmatpush3.bf16.msra.mxu0 %v4687_v15  ;;  %4297 = vmatpush3.bf16.msra.mxu1 %v4688_v16  ;;  %v1748_v15 = vrot.slane %v1725_v56, %v5973_v62  ;;  %v1756_v16 = vrot.slane %v1725_v56, %v1755_v53 }
 0x8ad   : > { %4276 = vmatprep.subr.bf16.mxu0 %v4689_v17  ;;  %4298 = vmatprep.subr.bf16.mxu1 %v4690_v18 }
 0x8b0   : > { %4277 = vmatpush3.bf16.msra.mxu0 %v4691_v9  ;;  %4299 = vmatpush3.bf16.msra.mxu1 %v4692_v19  ;;  %v1752_v9 = vrot.slane %v1725_v56, %v5976_v1  ;;  %v1760_v19 = vrot.slane %v1725_v56, %v1759_v2  ;;  %v1772_v56 = vrot.slane %v5958_v54, %v5867_v27 }
 0x8b1   : > { %4278 = vmatprep.subr.bf16.mxu0 %v4693_v22  ;;  %4300 = vmatprep.subr.bf16.mxu1 %v4694_v23  ;;  %v1776_v27 = vrot.slane %v5958_v54, %v5966_v57 }
 0x8b4   : > { %4279 = vmatpush3.bf16.msra.mxu0 %v4695_v26  ;;  %4301 = vmatpush3.bf16.msra.mxu1 %v4696_v30 }
 0x8b5   : > { %4280 = vmatprep.subr.bf16.mxu0 %v4697_v31  ;;  %4302 = vmatprep.subr.bf16.mxu1 %v4698_v29 }
 0x8b8   : > { %4281 = vmatpush3.bf16.msra.mxu0 %v4699_v35  ;;  %4303 = vmatpush3.bf16.msra.mxu1 %v4700_v36 }
 0x8b9   : > { %4282 = vmatprep.subr.bf16.mxu0 %v4701_v37  ;;  %4304 = vmatprep.subr.bf16.mxu1 %v4702_v38 }
 0x8bc   : > { %4283 = vmatpush3.bf16.msra.mxu0 %v4703_v39  ;;  %4305 = vmatpush3.bf16.msra.mxu1 %v4704_v20 }
 0x8bd   : > { %4284 = vmatprep.subr.bf16.mxu0 %v4705_v21  ;;  %4306 = vmatprep.subr.bf16.mxu1 %v4706_v42 }
 0x8c0   : > { %4285 = vmatpush3.bf16.msra.mxu0 %v4707_v43  ;;  %4307 = vmatpush3.bf16.msra.mxu1 %v4708_v44  ;;  %v4719_v43 = vld [vmem:[%s5636_s20 + $0x100] sm:$0xff]  }
 0x8c1   : > { %4286 = vmatprep.subr.bf16.mxu0 %v4709_v34  ;;  %4308 = vmatprep.subr.bf16.mxu1 %v4710_v45  ;;  %v4720_v44 = vld [vmem:[%s5636_s20 + $0x180] sm:$0xff]  }
 0x8c4   : > { %4287 = vmatpush3.bf16.msra.mxu0 %v4711_v46  ;;  %4309 = vmatpush3.bf16.msra.mxu1 %v4712_v47 }
 0x8c5   : > { %4288 = vmatprep.subr.bf16.mxu0 %v4713_v48  ;;  %4310 = vmatprep.subr.bf16.mxu1 %v4714_v49  ;;  %v4721_v48 = vld [vmem:[%s5636_s20 + $0x148] sm:$0xff]  }
 0x8c6   : > { %v4722_v49 = vld [vmem:[%s5636_s20 + $0x1c8] sm:$0xff]  }
 0x8c8   : > { %4289 = vmatpush3.bf16.msra.mxu0 %v4715_v24  ;;  %4311 = vmatpush3.bf16.msra.mxu1 %v4716_v50  ;;  %v1764_v24 = vrot.slane %v5958_v54, %v5836_v33  ;;  %v1768_v33 = vrot.slane %v5958_v54, %v5862_v3 }
 0x8c9   : > { %4318 = vmatprep.subr.bf16.mxu0 %v4717_v51  ;;  %4340 = vmatprep.subr.bf16.mxu1 %v4718_v52 }
 0x966   : > { %v2006_v63 = vpop.f32.mrb[36].mxu0  ;;  %v2049_v0 = vpop.f32.mrb[36].mxu1 }
 0x967   : > { %v2007_v5 = vadd.f32 %v2006_v63, %v1732_v58  ;;  %v2050_v25 = vadd.f32 %v2049_v0, %v1740_v59  ;;  %v2008_v4 = vpop.f32.mrb[37].mxu0  ;;  %v2051_v28 = vpop.f32.mrb[37].mxu1 }
 0x968   : > { %v2009_v6 = vadd.f32 %v2008_v4, %v1736_v60  ;;  %v2052_v7 = vadd.f32 %v2051_v28, %v1744_v61  ;;  %v2010_v8 = vpop.f32.mrb[38].mxu0  ;;  %v2053_v10 = vpop.f32.mrb[38].mxu1 }
 0x969   : > { %v2011_v11 = vadd.f32 %v2010_v8, %v1732_v58  ;;  %v2054_v12 = vadd.f32 %v2053_v10, %v1740_v59  ;;  %v2012_v13 = vpop.f32.mrb[39].mxu0  ;;  %v2055_v14 = vpop.f32.mrb[39].mxu1  ;;  %v2316_v22 = vmax.f32 %v2007_v5, 0.0  ;;  %v2318_v23 = vmax.f32 %v2050_v25, 0.0  ;;  %v4723_v5 = vld [vmem:[%s5636_s20 + $0x108] sm:$0xff]   ;;  %v4725_v8 = vld [vmem:[%s5636_s20 + $0x150] sm:$0xff]  }
 0x96a   : > { %v2013_v17 = vadd.f32 %v2012_v13, %v1736_v60  ;;  %v2056_v18 = vadd.f32 %v2055_v14, %v1744_v61  ;;  %v2317_v31 = vmax.f32 %v2009_v6, 0.0  ;;  %v2319_v29 = vmax.f32 %v2052_v7, 0.0  ;;  %v4724_v25 = vld [vmem:[%s5636_s20 + $0x188] sm:$0xff]   ;;  %v4726_v10 = vld [vmem:[%s5636_s20 + $0x1d0] sm:$0xff]  }
 0x96b   : > { %v2332_v26 = vmax.f32 %v2011_v11, 0.0  ;;  %v2334_v30 = vmax.f32 %v2054_v12, 0.0 }
 0x96c   : > { %v2333_v35 = vmax.f32 %v2013_v17, 0.0  ;;  %v2335_v36 = vmax.f32 %v2056_v18, 0.0 }
 0x96d   : > { %v2348_v37 = vpack.c.bf16 %v2332_v26, %v2316_v22  ;;  %v2350_v38 = vpack.c.bf16 %v2334_v30, %v2318_v23  ;;  %v4728_v22 = vld [vmem:[%s5636_s20 + $0x190] sm:$0xff]  }
 0x96e   : > { %v2349_v39 = vpack.c.bf16 %v2333_v35, %v2317_v31  ;;  %v2351_v20 = vpack.c.bf16 %v2335_v36, %v2319_v29  ;;  %v2092_v21 = vpop.f32.mrb[40].mxu0  ;;  %v2135_v42 = vpop.f32.mrb[40].mxu1  ;;  %v4729_v29 = vld [vmem:[%s5636_s20 + $0x158] sm:$0xff]  }
 0x96f   : > { %v2093_v34 = vadd.f32 %v2092_v21, %v1748_v15  ;;  %v2136_v45 = vadd.f32 %v2135_v42, %v1756_v16  ;;  %v2094_v46 = vpop.f32.mrb[41].mxu0  ;;  %v2137_v47 = vpop.f32.mrb[41].mxu1  ;;  %v4730_v35 = vld [vmem:[%s5636_s20 + $0x1d8] sm:$0xff]  }
 0x970   : > { %v2095_v50 = vadd.f32 %v2094_v46, %v1752_v9  ;;  %v2138_v51 = vadd.f32 %v2137_v47, %v1760_v19  ;;  %v2096_v52 = vpop.f32.mrb[42].mxu0  ;;  %v2139_v53 = vpop.f32.mrb[42].mxu1  ;;  %3424 = vmatprep.mubr.bf16.mxu0 %v2349_v39  ;;  %3465 = vmatprep.mubr.bf16.mxu1 %v2351_v20  ;;  %v4731_v47 = vld [vmem:[%s5636_s20 + $0x118] sm:$0xff]  }
 0x971   : > { %v2097_v58 = vadd.f32 %v2096_v52, %v1748_v15  ;;  %v2140_v59 = vadd.f32 %v2139_v53, %v1756_v16  ;;  %v2098_v60 = vpop.f32.mrb[43].mxu0  ;;  %v2141_v61 = vpop.f32.mrb[43].mxu1  ;;  %3425 = vmatmul.mubr.bf16.vlgmr.msra.gmra.mrb[52].mxu0 %v2348_v37  ;;  %3466 = vmatmul.mubr.bf16.vlgmr.msra.gmra.mrb[52].mxu1 %v2350_v38  ;;  %v2320_v4 = vmax.f32 %v2093_v34, 0.0  ;;  %v2322_v28 = vmax.f32 %v2136_v45, 0.0  ;;  %v4733_v53 = vld [vmem:[%s5636_s20 + $0x160] sm:$0xff]  }
 0x972   : > { %v2099_v63 = vadd.f32 %v2098_v60, %v1752_v9  ;;  %v2142_v0 = vadd.f32 %v2141_v61, %v1760_v19  ;;  %4319 = vmatpush3.bf16.msra.mxu0 %v4719_v43  ;;  %4341 = vmatpush3.bf16.msra.mxu1 %v4720_v44  ;;  %v2321_v3 = vmax.f32 %v2095_v50, 0.0  ;;  %v2323_v11 = vmax.f32 %v2138_v51, 0.0  ;;  %v4727_v19 = vld [vmem:[%s5636_s20 + $0x110] sm:$0xff]  }
 0x973   : > { %v2336_v6 = vmax.f32 %v2097_v58, 0.0  ;;  %v2338_v7 = vmax.f32 %v2140_v59, 0.0  ;;  %4320 = vmatprep.subr.bf16.mxu0 %v4721_v48  ;;  %4342 = vmatprep.subr.bf16.mxu1 %v4722_v49  ;;  %v1780_v44 = vrot.slane %v5958_v54, %v5973_v62  ;;  %v1784_v34 = vrot.slane %v5958_v54, %v5976_v1  ;;  %v4732_v48 = vld [vmem:[%s5636_s20 + $0x198] sm:$0xff]  }
 0x974   : > { %v2337_v12 = vmax.f32 %v2099_v63, 0.0  ;;  %v2339_v13 = vmax.f32 %v2142_v0, 0.0  ;;  %v1792_v49 = vrot.slane %v5958_v54, %v1759_v2 }
 0x975   : > { %v5999_v14 = vpack.c.bf16 %v2336_v6, %v2320_v4  ;;  %v6001_v15 = vpack.c.bf16 %v2338_v7, %v2322_v28  ;;  %v4737_v7 = vld [vmem:[%s5636_s20 + $0x168] sm:$0xff]  }
 0x976   : > { %v2353_v16 = vpack.c.bf16 %v2337_v12, %v2321_v3  ;;  %v2355_v17 = vpack.c.bf16 %v2339_v13, %v2323_v11  ;;  %4321 = vmatpush3.bf16.msra.mxu0 %v4723_v5  ;;  %4343 = vmatpush3.bf16.msra.mxu1 %v4724_v25  ;;  %v2178_v18 = vpop.f32.mrb[44].mxu0  ;;  %v2221_v9 = vpop.f32.mrb[44].mxu1  ;;  %v4735_v5 = vld [vmem:[%s5636_s20 + $0x120] sm:$0xff]  }
 0x977   : > { %v2179_v23 = vadd.f32 %v2178_v18, %v1764_v24  ;;  %v2222_v26 = vadd.f32 %v2221_v9, %v1772_v56  ;;  %v2180_v30 = vpop.f32.mrb[45].mxu0  ;;  %v2223_v31 = vpop.f32.mrb[45].mxu1  ;;  %4322 = vmatprep.subr.bf16.mxu0 %v4725_v8  ;;  %4344 = vmatprep.subr.bf16.mxu1 %v4726_v10  ;;  %v4736_v25 = vld [vmem:[%s5636_s20 + $0x1a0] sm:$0xff]   ;;  %v4738_v8 = vld [vmem:[%s5636_s20 + $0x1e8] sm:$0xff]  }
 0x978   : > { %v2181_v36 = vadd.f32 %v2180_v30, %v1768_v33  ;;  %v2224_v37 = vadd.f32 %v2223_v31, %v1776_v27  ;;  %v2182_v38 = vpop.f32.mrb[46].mxu0  ;;  %v2225_v39 = vpop.f32.mrb[46].mxu1  ;;  %3506 = vmatprep.mubr.bf16.mxu0 %v2353_v16  ;;  %3547 = vmatprep.mubr.bf16.mxu1 %v2355_v17 }
 0x979   : > { %v2183_v20 = vadd.f32 %v2182_v38, %v1764_v24  ;;  %v2226_v21 = vadd.f32 %v2225_v39, %v1772_v56  ;;  %v2184_v42 = vpop.f32.mrb[47].mxu0  ;;  %v2227_v43 = vpop.f32.mrb[47].mxu1  ;;  %v2324_v24 = vmax.f32 %v2179_v23, 0.0  ;;  %v2326_v50 = vmax.f32 %v2222_v26, 0.0  ;;  %v4734_v56 = vld [vmem:[%s5636_s20 + $0x1e0] sm:$0xff]   ;;  %v4740_v23 = vld [vmem:[%s5636_s20 + $0x1a8] sm:$0xff]  }
 0x97a   : > { %v2185_v45 = vadd.f32 %v2184_v42, %v1768_v33  ;;  %v2228_v46 = vadd.f32 %v2227_v43, %v1776_v27  ;;  %4323 = vmatpush3.bf16.msra.mxu0 %v4727_v19  ;;  %4345 = vmatpush3.bf16.msra.mxu1 %v4728_v22  ;;  %v2325_v58 = vmax.f32 %v2181_v36, 0.0  ;;  %v2327_v59 = vmax.f32 %v2224_v37, 0.0  ;;  %v4739_v22 = vld [vmem:[%s5636_s20 + $0x128] sm:$0xff]  }
 0x97b   : > { %v2340_v51 = vmax.f32 %v2183_v20, 0.0  ;;  %v2342_v52 = vmax.f32 %v2226_v21, 0.0  ;;  %4324 = vmatprep.subr.bf16.mxu0 %v4729_v29  ;;  %4346 = vmatprep.subr.bf16.mxu1 %v4730_v35  ;;  %v4741_v35 = vld [vmem:[%s5636_s20 + $0x170] sm:$0xff]  }
 0x97c   : > { %v2341_v60 = vmax.f32 %v2185_v45, 0.0  ;;  %v2343_v61 = vmax.f32 %v2228_v46, 0.0  ;;  %v4745_v45 = vld [vmem:[%s5636_s20 + $0x178] sm:$0xff]  }
 0x97d   : > { %v6018_v33 = vpack.c.bf16 %v2340_v51, %v2324_v24  ;;  %v6020_v32 = vpack.c.bf16 %v2342_v52, %v2326_v50  ;;  %v4746_v46 = vld [vmem:[%s5636_s20 + $0x1f8] sm:$0xff]   ;;  %v4750_v24 = vld [vmem:[%s5636_s20 + $0x2c0] sm:$0xff]   ;;  %v4753_v52 = vld [vmem:[%s5636_s20 + $0x248] sm:$0xff]  }
 0x97e   : > { %v6022_v54 = vpack.c.bf16 %v2341_v60, %v2325_v58  ;;  %v6024_v2 = vpack.c.bf16 %v2343_v61, %v2327_v59  ;;  %4325 = vmatpush3.bf16.msra.mxu0 %v4731_v47  ;;  %4347 = vmatpush3.bf16.msra.mxu1 %v4732_v48  ;;  %v2264_v63 = vpop.f32.mrb[48].mxu0  ;;  %v2307_v0 = vpop.f32.mrb[48].mxu1  ;;  %v4747_v47 = vld [vmem:[%s5636_s20 + $0x138] sm:$0xff]   ;;  %v4751_v50 = vld [vmem:[%s5636_s20 + $0x200] sm:$0xff]   ;;  %v4756_v58 = vld [vmem:[%s5636_s20 + $0x288] sm:$0xff]  }
 0x97f   : > { %v2265_v27 = vadd.f32 %v2264_v63, %v1780_v44  ;;  %v2308_v4 = vadd.f32 %v2307_v0, %v5961_v55  ;;  %v2266_v28 = vpop.f32.mrb[49].mxu0  ;;  %v2309_v6 = vpop.f32.mrb[49].mxu1  ;;  %4326 = vmatprep.subr.bf16.mxu0 %v4733_v53  ;;  %4348 = vmatprep.subr.bf16.mxu1 %v4734_v56  ;;  %v4748_v48 = vld [vmem:[%s5636_s20 + $0x1b8] sm:$0xff]   ;;  %v4752_v51 = vld [vmem:[%s5636_s20 + $0x280] sm:$0xff]   ;;  %v4754_v53 = vld [vmem:[%s5636_s20 + $0x2c8] sm:$0xff]  }
 0x980   : > { %v2267_v10 = vadd.f32 %v2266_v28, %v1784_v34  ;;  %v2310_v3 = vadd.f32 %v2309_v6, %v1792_v49  ;;  %v2268_v11 = vpop.f32.mrb[50].mxu0  ;;  %v2311_v12 = vpop.f32.mrb[50].mxu1  ;;  %v4755_v56 = vld [vmem:[%s5636_s20 + $0x208] sm:$0xff]   ;;  %v4757_v59 = vld [vmem:[%s5636_s20 + $0x250] sm:$0xff]   ;;  %v4761_v61 = vld [vmem:[%s5636_s20 + $0x258] sm:$0xff]  }
 0x981   : > { %v2269_v13 = vadd.f32 %v2268_v11, %v1780_v44  ;;  %v2312_v16 = vadd.f32 %v2311_v12, %v5961_v55  ;;  %v2270_v17 = vpop.f32.mrb[51].mxu0  ;;  %v2313_v18 = vpop.f32.mrb[51].mxu1  ;;  %v2328_v26 = vmax.f32 %v2265_v27, 0.0  ;;  %v2330_v30 = vmax.f32 %v2308_v4, 0.0  ;;  %v4742_v55 = vld [vmem:[%s5636_s20 + $0x1f0] sm:$0xff]   ;;  %v4764_v63 = vld [vmem:[%s5636_s20 + $0x298] sm:$0xff]  }
 0x982   : > { %v2271_v9 = vadd.f32 %v2270_v17, %v1784_v34  ;;  %v2314_v19 = vadd.f32 %v2313_v18, %v1792_v49  ;;  %4327 = vmatpush3.bf16.msra.mxu0 %v4735_v5  ;;  %4349 = vmatpush3.bf16.msra.mxu1 %v4736_v25  ;;  %v2329_v36 = vmax.f32 %v2267_v10, 0.0  ;;  %v2331_v37 = vmax.f32 %v2310_v3, 0.0  ;;  %v4743_v44 = vld [vmem:[%s5636_s20 + $0x130] sm:$0xff]   ;;  %v4749_v49 = vld [vmem:[%s5636_s20 + $0x240] sm:$0xff]   ;;  %v4769_v4 = vld [vmem:[%s5636_s20 + $0x268] sm:$0xff]  }
 0x983   : > { %v2344_v31 = vmax.f32 %v2269_v13, 0.0  ;;  %v2346_v29 = vmax.f32 %v2312_v16, 0.0  ;;  %4328 = vmatprep.subr.bf16.mxu0 %v4737_v7  ;;  %4350 = vmatprep.subr.bf16.mxu1 %v4738_v8  ;;  %v4744_v34 = vld [vmem:[%s5636_s20 + $0x1b0] sm:$0xff]   ;;  %v4765_v0 = vld [vmem:[%s5636_s20 + $0x260] sm:$0xff]   ;;  %v4770_v28 = vld [vmem:[%s5636_s20 + $0x2e8] sm:$0xff]  }
 0x984   : > { %v2345_v38 = vmax.f32 %v2271_v9, 0.0  ;;  %v2347_v39 = vmax.f32 %v2314_v19, 0.0  ;;  %v4760_v60 = vld [vmem:[%s5636_s20 + $0x290] sm:$0xff]   ;;  %v4766_v5 = vld [vmem:[%s5636_s20 + $0x2e0] sm:$0xff]   ;;  %v4771_v6 = vld [vmem:[%s5636_s20 + $0x228] sm:$0xff]  }
 0x985   : > { %v6036_v20 = vpack.c.bf16 %v2344_v31, %v2328_v26  ;;  %v6038_v21 = vpack.c.bf16 %v2346_v29, %v2330_v30  ;;  %v4767_v25 = vld [vmem:[%s5636_s20 + $0x220] sm:$0xff]   ;;  %v4772_v7 = vld [vmem:[%s5636_s20 + $0x2a8] sm:$0xff]   ;;  %v4773_v8 = vld [vmem:[%s5636_s20 + $0x270] sm:$0xff]  }
 0x986   : > { %v6040_v42 = vpack.c.bf16 %v2345_v38, %v2329_v36  ;;  %v6042_v43 = vpack.c.bf16 %v2347_v39, %v2331_v37  ;;  %4329 = vmatpush3.bf16.msra.mxu0 %v4739_v22  ;;  %4351 = vmatpush3.bf16.msra.mxu1 %v4740_v23  ;;  %v4768_v27 = vld [vmem:[%s5636_s20 + $0x2a0] sm:$0xff]   ;;  %v4774_v10 = vld [vmem:[%s5636_s20 + $0x2f0] sm:$0xff]   ;;  %v4777_v12 = vld [vmem:[%s5636_s20 + $0x278] sm:$0xff]  }
 0x987   : > { %4330 = vmatprep.subr.bf16.mxu0 %v4741_v35  ;;  %4352 = vmatprep.subr.bf16.mxu1 %v4742_v55  ;;  %v4775_v3 = vld [vmem:[%s5636_s20 + $0x230] sm:$0xff]   ;;  %v4778_v13 = vld [vmem:[%s5636_s20 + $0x2f8] sm:$0xff]   ;;  %v4781_v18 = vld [vmem:[%s5636_s20 + $0x340] sm:$0xff]  }
 0x988   : > { %v4776_v11 = vld [vmem:[%s5636_s20 + $0x2b0] sm:$0xff]   ;;  %v4779_v16 = vld [vmem:[%s5636_s20 + $0x238] sm:$0xff]   ;;  %v4782_v9 = vld [vmem:[%s5636_s20 + $0x3c0] sm:$0xff]  }
 0x989   : > { %v4780_v17 = vld [vmem:[%s5636_s20 + $0x2b8] sm:$0xff]   ;;  %v4783_v19 = vld [vmem:[%s5636_s20 + $0x300] sm:$0xff]   ;;  %v4785_v23 = vld [vmem:[%s5636_s20 + $0x348] sm:$0xff]  }
 0x98a   : > { %4331 = vmatpush3.bf16.msra.mxu0 %v4743_v44  ;;  %4353 = vmatpush3.bf16.msra.mxu1 %v4744_v34  ;;  %v4784_v22 = vld [vmem:[%s5636_s20 + $0x380] sm:$0xff]   ;;  %v4786_v26 = vld [vmem:[%s5636_s20 + $0x3c8] sm:$0xff]   ;;  %v4789_v29 = vld [vmem:[%s5636_s20 + $0x350] sm:$0xff]  }
 0x98b   : > { %4332 = vmatprep.subr.bf16.mxu0 %v4745_v45  ;;  %4354 = vmatprep.subr.bf16.mxu1 %v4746_v46  ;;  %v4787_v30 = vld [vmem:[%s5636_s20 + $0x308] sm:$0xff]   ;;  %v4792_v35 = vld [vmem:[%s5636_s20 + $0x390] sm:$0xff]   ;;  %v4793_v55 = vld [vmem:[%s5636_s20 + $0x358] sm:$0xff]  }
 0x98c   : > { %v4788_v31 = vld [vmem:[%s5636_s20 + $0x388] sm:$0xff]   ;;  %v4794_v36 = vld [vmem:[%s5636_s20 + $0x3d8] sm:$0xff]   ;;  %v4797_v39 = vld [vmem:[%s5636_s20 + $0x360] sm:$0xff]  }
 0x98d   : > { %v4795_v37 = vld [vmem:[%s5636_s20 + $0x318] sm:$0xff]   ;;  %v4800_v44 = vld [vmem:[%s5636_s20 + $0x3a0] sm:$0xff]   ;;  %v4801_v34 = vld [vmem:[%s5636_s20 + $0x368] sm:$0xff]  }
 0x98e   : > { %4333 = vmatpush3.bf16.msra.mxu0 %v4747_v47  ;;  %4355 = vmatpush3.bf16.msra.mxu1 %v4748_v48  ;;  %v4796_v38 = vld [vmem:[%s5636_s20 + $0x398] sm:$0xff]   ;;  %v4802_v45 = vld [vmem:[%s5636_s20 + $0x3e8] sm:$0xff]   ;;  %v4805_v48 = vld [vmem:[%s5636_s20 + $0x370] sm:$0xff]  }
 0x98f   : > { %4362 = vmatprep.subr.bf16.mxu0 %v4749_v49  ;;  %4384 = vmatprep.subr.bf16.mxu1 %v4750_v24  ;;  %v4803_v46 = vld [vmem:[%s5636_s20 + $0x328] sm:$0xff]   ;;  %v4806_v49 = vld [vmem:[%s5636_s20 + $0x3f0] sm:$0xff]  }
 0x990   : > { %v4804_v47 = vld [vmem:[%s5636_s20 + $0x3a8] sm:$0xff]   ;;  %v4807_v24 = vld [vmem:[%s5636_s20 + $0x330] sm:$0xff]  }
 0x991   : > { %3507 = vmatmul.mubr.bf16.vlgmr.msra.gmra.mrb[56].mxu0 %v5999_v14  ;;  %3548 = vmatmul.mubr.bf16.vlgmr.msra.gmra.mrb[56].mxu1 %v6001_v15  ;;  %v4758_v14 = vld [vmem:[%s5636_s20 + $0x2d0] sm:$0xff]  }
 0x992   : > { %4363 = vmatpush3.bf16.msra.mxu0 %v4751_v50  ;;  %3588 = vmatprep.mubr.bf16.mxu0 %v6022_v54  ;;  %v4759_v15 = vld [vmem:[%s5636_s20 + $0x210] sm:$0xff]   ;;  %v4762_v54 = vld [vmem:[%s5636_s20 + $0x2d8] sm:$0xff]  }
 0x993   : > { %4385 = vmatpush3.bf16.msra.mxu1 %v4752_v51  ;;  %3629 = vmatprep.mubr.bf16.mxu1 %v6024_v2  ;;  %v4763_v2 = vld [vmem:[%s5636_s20 + $0x218] sm:$0xff]   ;;  %v4808_v50 = vld [vmem:[%s5636_s20 + $0x3b0] sm:$0xff]  }
 0x994   : > { %4364 = vmatprep.subr.bf16.mxu0 %v4753_v52  ;;  %4386 = vmatprep.subr.bf16.mxu1 %v4754_v53  ;;  %v4809_v51 = vld [vmem:[%s5636_s20 + $0x378] sm:$0xff]  }
 0x995   : > { %v4810_v52 = vld [vmem:[%s5636_s20 + $0x3f8] sm:$0xff]  }
 0x996   : > { %4365 = vmatpush3.bf16.msra.mxu0 %v4755_v56  ;;  %v4811_v53 = vld [vmem:[%s5636_s20 + $0x338] sm:$0xff]  }
 0x997   : > { %4387 = vmatpush3.bf16.msra.mxu1 %v4756_v58  ;;  %4366 = vmatprep.subr.bf16.mxu0 %v4757_v59  ;;  %v4812_v56 = vld [vmem:[%s5636_s20 + $0x3b8] sm:$0xff]  }
 0x998   : > { %4388 = vmatprep.subr.bf16.mxu1 %v4758_v14  ;;  %v6125_v14 = vld [vmem:[%s5639_s18] sm:$0x3f] }
 0x99a   : > { %4367 = vmatpush3.bf16.msra.mxu0 %v4759_v15  ;;  %v2623_v15 = vrot.slane %v6125_v14, %v5976_v1 }
 0x99b   : > { %4389 = vmatpush3.bf16.msra.mxu1 %v4760_v60  ;;  %4368 = vmatprep.subr.bf16.mxu0 %v4761_v61 }
 0x99c   : > { %4390 = vmatprep.subr.bf16.mxu1 %v4762_v54 }
 0x99e   : > { %4369 = vmatpush3.bf16.msra.mxu0 %v4763_v2 }
 0x99f   : > { %4391 = vmatpush3.bf16.msra.mxu1 %v4764_v63  ;;  %4370 = vmatprep.subr.bf16.mxu0 %v4765_v0 }
 0x9a0   : > { %4392 = vmatprep.subr.bf16.mxu1 %v4766_v5 }
 0x9a2   : > { %4371 = vmatpush3.bf16.msra.mxu0 %v4767_v25 }
 0x9a3   : > { %4393 = vmatpush3.bf16.msra.mxu1 %v4768_v27  ;;  %4372 = vmatprep.subr.bf16.mxu0 %v4769_v4 }
 0x9a4   : > { %4394 = vmatprep.subr.bf16.mxu1 %v4770_v28 }
 0x9a6   : > { %4373 = vmatpush3.bf16.msra.mxu0 %v4771_v6 }
 0x9a7   : > { %4395 = vmatpush3.bf16.msra.mxu1 %v4772_v7  ;;  %4374 = vmatprep.subr.bf16.mxu0 %v4773_v8 }
 0x9a8   : > { %4396 = vmatprep.subr.bf16.mxu1 %v4774_v10 }
 0x9aa   : > { %4375 = vmatpush3.bf16.msra.mxu0 %v4775_v3 }
 0x9ab   : > { %4397 = vmatpush3.bf16.msra.mxu1 %v4776_v11  ;;  %4376 = vmatprep.subr.bf16.mxu0 %v4777_v12 }
 0x9ac   : > { %4398 = vmatprep.subr.bf16.mxu1 %v4778_v13 }
 0x9ae   : > { %4377 = vmatpush3.bf16.msra.mxu0 %v4779_v16 }
 0x9af   : > { %4399 = vmatpush3.bf16.msra.mxu1 %v4780_v17  ;;  %4406 = vmatprep.subr.bf16.mxu0 %v4781_v18 }
 0x9b0   : > { %4428 = vmatprep.subr.bf16.mxu1 %v4782_v9 }
 0x9b1   : > { %3589 = vmatmul.mubr.bf16.vlgmr.msra.gmra.mrb[60].mxu0 %v6018_v33  ;;  %v4790_v33 = vld [vmem:[%s5636_s20 + $0x3d0] sm:$0xff]  }
 0x9b2   : > { %3630 = vmatmul.mubr.bf16.vlgmr.msra.gmra.mrb[60].mxu1 %v6020_v32  ;;  %4407 = vmatpush3.bf16.msra.mxu0 %v4783_v19  ;;  %v4791_v32 = vld [vmem:[%s5636_s20 + $0x310] sm:$0xff]  }
 0x9b3   : > { %3670 = vmatprep.mubr.bf16.mxu0 %v6040_v42  ;;  %4429 = vmatpush3.bf16.msra.mxu1 %v4784_v22  ;;  %v4798_v42 = vld [vmem:[%s5636_s20 + $0x3e0] sm:$0xff]  }
 0x9b4   : > { %3711 = vmatprep.mubr.bf16.mxu1 %v6042_v43  ;;  %4408 = vmatprep.subr.bf16.mxu0 %v4785_v23  ;;  %v4799_v43 = vld [vmem:[%s5636_s20 + $0x320] sm:$0xff]  }
 0x9b5   : > { %4430 = vmatprep.subr.bf16.mxu1 %v4786_v26 }
 0x9b6   : > { %4409 = vmatpush3.bf16.msra.mxu0 %v4787_v30 }
 0x9b7   : > { %4431 = vmatpush3.bf16.msra.mxu1 %v4788_v31  ;;  %4410 = vmatprep.subr.bf16.mxu0 %v4789_v29 }
 0x9b8   : > { %4432 = vmatprep.subr.bf16.mxu1 %v4790_v33 }
 0x9ba   : > { %4411 = vmatpush3.bf16.msra.mxu0 %v4791_v32 }
 0x9bb   : > { %4433 = vmatpush3.bf16.msra.mxu1 %v4792_v35  ;;  %4412 = vmatprep.subr.bf16.mxu0 %v4793_v55 }
 0x9bc   : > { %4434 = vmatprep.subr.bf16.mxu1 %v4794_v36 }
 0x9be   : > { %4413 = vmatpush3.bf16.msra.mxu0 %v4795_v37 }
 0x9bf   : > { %4435 = vmatpush3.bf16.msra.mxu1 %v4796_v38  ;;  %4414 = vmatprep.subr.bf16.mxu0 %v4797_v39 }
 0x9c0   : > { %4436 = vmatprep.subr.bf16.mxu1 %v4798_v42 }
 0x9c2   : > { %4415 = vmatpush3.bf16.msra.mxu0 %v4799_v43 }
 0x9c3   : > { %4437 = vmatpush3.bf16.msra.mxu1 %v4800_v44  ;;  %4416 = vmatprep.subr.bf16.mxu0 %v4801_v34 }
 0x9c4   : > { %4438 = vmatprep.subr.bf16.mxu1 %v4802_v45 }
 0x9c6   : > { %4417 = vmatpush3.bf16.msra.mxu0 %v4803_v46 }
 0x9c7   : > { %4439 = vmatpush3.bf16.msra.mxu1 %v4804_v47  ;;  %4418 = vmatprep.subr.bf16.mxu0 %v4805_v48 }
 0x9c8   : > { %4440 = vmatprep.subr.bf16.mxu1 %v4806_v49 }
 0x9ca   : > { %4419 = vmatpush3.bf16.msra.mxu0 %v4807_v24 }
 0x9cb   : > { %4441 = vmatpush3.bf16.msra.mxu1 %v4808_v50  ;;  %4420 = vmatprep.subr.bf16.mxu0 %v4809_v51 }
 0x9cc   : > { %4442 = vmatprep.subr.bf16.mxu1 %v4810_v52 }
 0x9ce   : > { %4421 = vmatpush3.bf16.msra.mxu0 %v4811_v53 }
 0x9cf   : > { %4443 = vmatpush3.bf16.msra.mxu1 %v4812_v56 }
 0x9d1   : > { %3671 = vmatmul.mubr.bf16.vlgmr.msra.gmra.mrb[64].mxu0 %v6036_v20 }
 0x9d2   : > { %3712 = vmatmul.mubr.bf16.vlgmr.msra.gmra.mrb[64].mxu1 %v6038_v21 }
 0xa44   : > { %v4290_v58 = vpop.f32.mrb[52].mxu0  ;;  %v4312_v59 = vpop.f32.mrb[52].mxu1 }
 0xa45   : > { %v4291_v60 = vpop.f32.mrb[53].mxu0  ;;  %v4313_v61 = vpop.f32.mrb[53].mxu1 }
 0xa46   : > { %v4292_v54 = vadd.f32 %v4291_v60, %v4290_v58  ;;  %v4314_v2 = vadd.f32 %v4313_v61, %v4312_v59  ;;  %v4293_v63 = vpop.f32.mrb[54].mxu0  ;;  %v4315_v0 = vpop.f32.mrb[54].mxu1 }
 0xa47   : > { %v4294_v5 = vpop.f32.mrb[55].mxu0  ;;  %v4316_v25 = vpop.f32.mrb[55].mxu1 }
 0xa48   : > { %v3427_v27 = vadd.f32 %v4292_v54, %v2623_v15  ;;  %v4295_v4 = vadd.f32 %v4294_v5, %v4293_v63  ;;  %v4317_v20 = vadd.f32 %v4316_v25, %v4315_v0 }
 0xa4a   : > { %v3468_v28 = vadd.f32 %v4314_v2, %v3427_v27  ;;  %v3430_v21 = vadd.f32 %v4295_v4, %v2623_v15 }
 0xa4c   : > { %v3471_v6 = vadd.f32 %v4317_v20, %v3430_v21 }
 0xa64   : > { %v4334_v7 = vpop.f32.mrb[56].mxu0  ;;  %v4356_v8 = vpop.f32.mrb[56].mxu1 }
 0xa65   : > { %v4335_v10 = vpop.f32.mrb[57].mxu0  ;;  %v4357_v3 = vpop.f32.mrb[57].mxu1 }
 0xa66   : > { %v4336_v11 = vadd.f32 %v4335_v10, %v4334_v7  ;;  %v4358_v1 = vadd.f32 %v4357_v3, %v4356_v8  ;;  %v4337_v12 = vpop.f32.mrb[58].mxu0  ;;  %v4359_v13 = vpop.f32.mrb[58].mxu1 }
 0xa67   : > { %v4338_v16 = vpop.f32.mrb[59].mxu0  ;;  %v4360_v17 = vpop.f32.mrb[59].mxu1 }
 0xa68   : > { %v3509_v18 = vadd.f32 %v4336_v11, %v3468_v28  ;;  %v4339_v9 = vadd.f32 %v4338_v16, %v4337_v12  ;;  %v4361_v19 = vadd.f32 %v4360_v17, %v4359_v13  ;;  %v3751_v13 = vrot.slane %v6125_v14, %v5966_v57 }
 0xa69   : > { %v3757_v17 = vrot.slane %v6125_v14, %v5973_v62 }
 0xa6a   : > { %v3550_v22 = vadd.f32 %v4358_v1, %v3509_v18  ;;  %v3512_v23 = vadd.f32 %v4339_v9, %v3471_v6 }
 0xa6c   : > { %v3553_v26 = vadd.f32 %v4361_v19, %v3512_v23 }
 0xa84   : > { %v4378_v30 = vpop.f32.mrb[60].mxu0 }
 0xa85   : > { %v4400_v31 = vpop.f32.mrb[60].mxu1  ;;  %v4379_v29 = vpop.f32.mrb[61].mxu0 }
 0xa86   : > { %v4380_v33 = vadd.f32 %v4379_v29, %v4378_v30  ;;  %v4401_v32 = vpop.f32.mrb[61].mxu1  ;;  %v4381_v35 = vpop.f32.mrb[62].mxu0 }
 0xa87   : > { %v4402_v55 = vadd.f32 %v4401_v32, %v4400_v31  ;;  %v4403_v36 = vpop.f32.mrb[62].mxu1  ;;  %v4382_v37 = vpop.f32.mrb[63].mxu0 }
 0xa88   : > { %v3591_v38 = vadd.f32 %v4380_v33, %v3550_v22  ;;  %v4383_v39 = vadd.f32 %v4382_v37, %v4381_v35  ;;  %v4404_v42 = vpop.f32.mrb[63].mxu1 }
 0xa89   : > { %v4405_v43 = vadd.f32 %v4404_v42, %v4403_v36 }
 0xa8a   : > { %v3632_v44 = vadd.f32 %v4402_v55, %v3591_v38  ;;  %v3594_v34 = vadd.f32 %v4383_v39, %v3553_v26 }
 0xa8c   : > { %v3635_v45 = vadd.f32 %v4405_v43, %v3594_v34 }
 0xaa4   : > { %v4422_v46 = vpop.f32.mrb[64].mxu0 }
 0xaa5   : > { %v4444_v47 = vpop.f32.mrb[64].mxu1  ;;  %v4423_v48 = vpop.f32.mrb[65].mxu0 }
 0xaa6   : > { %v4424_v49 = vadd.f32 %v4423_v48, %v4422_v46  ;;  %v4445_v24 = vpop.f32.mrb[65].mxu1  ;;  %v4425_v50 = vpop.f32.mrb[66].mxu0 }
 0xaa7   : > { %v4446_v51 = vadd.f32 %v4445_v24, %v4444_v47  ;;  %v4447_v52 = vpop.f32.mrb[66].mxu1  ;;  %v4426_v53 = vpop.f32.mrb[67].mxu0 }
 0xaa8   : > { %v3673_v56 = vadd.f32 %v4424_v49, %v3632_v44  ;;  %v4427_v58 = vadd.f32 %v4426_v53, %v4425_v50  ;;  %v4448_v59 = vpop.f32.mrb[67].mxu1 }
 0xaa9   : > { %v4449_v15 = vadd.f32 %v4448_v59, %v4447_v52 }
 0xaaa   : > { %v3714_v60 = vadd.f32 %v4446_v51, %v3673_v56  ;;  %v3676_v61 = vadd.f32 %v4427_v58, %v3635_v45 }
 0xaac   : > { %v3717_v54 = vadd.f32 %v4449_v15, %v3676_v61  ;;  %v3720_v2 = vadd.f32 %v3714_v60, %v5875_v40 }
 0xaae   : > { %v3722_v63 = vsel %vm610_vm2, %v3720_v2, 0.0  ;;  %v3721_v0 = vadd.f32 %v3717_v54, %v5877_v41 }
 0xaaf   : > { %3723 = vadd.xlane.f32.xlu1 %v3722_v63 }
 0xab0   : > { %v3725_v5 = vsel %vm610_vm2, %v3721_v0, 0.0 }
 0xab1   : > { %3726 = vadd.xlane.f32.xlu0 %v3725_v5 }
 0xb3c   : > { %v3724_v25 = vpop.xlane.xlu1 %3723 }
 0xb3d   : > { %v3728_v27 = vmul.f32 0.03125, %v3724_v25 }
 0xb3e   : > { %v3727_v4 = vpop.xlane.xlu0 %3726 }
 0xb3f   : > { %v3730_v20 = vsub.f32 %v3720_v2, %v3728_v27  ;;  %v3729_v28 = vmul.f32 0.03125, %v3727_v4 }
 0xb41   : > { %v3731_v21 = vsub.f32 %v3721_v0, %v3729_v28  ;;  %v3732_v6 = vmul.f32 %v3730_v20, %v3730_v20 }
 0xb43   : > { %v3734_v7 = vsel %vm610_vm2, %v3732_v6, 0.0  ;;  %v3733_v8 = vmul.f32 %v3731_v21, %v3731_v21 }
 0xb44   : > { %3735 = vadd.xlane.f32.xlu1 %v3734_v7 }
 0xb45   : > { %v3737_v40 = vsel %vm610_vm2, %v3733_v8, 0.0 }
 0xb46   : > { %3738 = vadd.xlane.f32.xlu0 %v3737_v40 }
 0xbd1   : > { %v3736_v10 = vpop.xlane.xlu1 %3735 }
 0xbd2   : > { %v3740_v41 = vmul.f32 0.03125, %v3736_v10 }
 0xbd3   : > { %v3739_v3 = vpop.xlane.xlu0 %3738 }
 0xbd4   : > { %v3742_v11 = vadd.f32 1e-05, %v3740_v41  ;;  %v3741_v1 = vmul.f32 0.03125, %v3739_v3 }
 0xbd6   : > { %4849 = vrsqrt.f32 %v3742_v11  ;;  %v3743_v12 = vadd.f32 1e-05, %v3741_v1 }
 0xbd8   : > { %4851 = vrsqrt.f32 %v3743_v12 }
 0xbe0   : > { %v4850_v16 = vpop.eup %4849 }
 0xbe1   : > { %v3746_v18 = vmul.f32 %v4850_v16, %v3730_v20 }
 0xbe2   : > { %v4852_v9 = vpop.eup %4851 }
 0xbe3   : > { %v3752_v19 = vmul.f32 %v3751_v13, %v3746_v18  ;;  %v3747_v22 = vmul.f32 %v4852_v9, %v3731_v21  ;;  %3765 = sbr.rel (%p4220_p6) target bundleno = 3053 (0xbed), region = 92 }
 0xbe5   : > { %v3758_v23 = vadd.f32 %v3757_v17, %v3752_v19  ;;  %v3753_v26 = vmul.f32 %v3751_v13, %v3747_v22 }
 0xbe7   : > { %3760 = vst.msk [vmem:[#allocation2] sm:$0xff] %vm610_vm2, %v3758_v23  ;;  %v3759_v30 = vadd.f32 %v3757_v17, %v3753_v26  ;;  %v3767_v31 = vrot.slane (!%p4220_p6), %v3758_v23, 7 }
 0xbe9   : > { %3761 = vst.msk [vmem:[#allocation2 + $0x8] sm:$0xff] %vm610_vm2, %v3759_v30  ;;  %v3770_v57 = vrot.slane (!%p4220_p6), %v3759_v30, 6 }
 0xbeb   : > { %v3773_v29 = vsel %vm3772_vm7, %v3767_v31, %v3770_v57 }
 0xbec   : > { %3775 = vst.msk [vmem:[#allocation17] sm:$0x3] %vm3774_vm8, %v3773_v29 }
 0xbed PF: > { %p4613_p3 = scmp.eq.s32.totalorder %s5427_s25, 1  ;;  %s5216_s16 = smov [#allocation17]  }
 0xbee   : > { %s3785_s21 = sshll.u32 %s5216_s16, 4  ;;  %s3786_s21 = int_to_ptr.vmem [resolvable:$true] %s3785_s21 }
 0xbef   : > { %s5094_s14 = scalar_lea.vmem %s3786_s21, 32  ;;  %p5101_p9 = scmp.lt.s32.totalorder %s3786_s21, %s3786_s21 }
 0xbf0   : > { %p5095_p1 = scmp.ne.s32.totalorder %s3786_s21, %s5094_s14  ;;  %p5102_p2 = scmp.lt.s32.totalorder %s5094_s14, %s5094_s14 }
 0xbf2   : > { %p5096_p11 = pnand %p5095_p1, %p4613_p3  ;;  %p5103_p4 = por %p5102_p2, %p5101_p9 }
 0xbf4   : > { %p5097_p13 = pneg %p5096_p11 }
 0xbf6   : > { %p5104_p8 = pnand %p5103_p4, %p5097_p13 }
 0xbf8   : > { %5107 = shalt.err (!%p5104_p8)
}
 0xbf9   : > { %s5108_s17 = scalar_lea.hbm %s6191_s8, 32 }
 0xbfa   : > { %p5109_p12 = scmp.ne.s32.totalorder %s6191_s8, %s5108_s17  ;;  %p5114_p7 = scmp.lt.u32.totalorder %s5108_s17, %s6191_s8 }
 0xbfc   : > { %p5110_p10 = pnand %p5109_p12, %p4613_p3 }
 0xbfe   : > { %p5111_p0 = pneg %p5110_p10 }
 0xc00   : > { %p5116_p5 = pnand %p5114_p7, %p5111_p0 }
 0xc02   : > { %5119 = shalt.err (!%p5116_p5)
}
 0xc03   : > { %4581 = dma.vmem_to_hbm [thread:$0]  (%p4613_p3), %s3786_s21, 32, %s6191_s8, [#allocation5]  }
 0xc04   : > { %5165 = dma.done.wait (%p4613_p3), [#allocation5], 32  }
 0xc05   : > { %5167 = vsyncadd (%p4613_p3), [#allocation5], 4294967264 }
 0xc06 PF: > { %s32_s10 = sadd.s32 1, %s5190_s10   ;;  %s6235_s18 = sld [smem:[#allocation24_spill]] }
 0xc07   : > { %p29_p6 = scmp.ge.s32.totalorder %s32_s10, 4   ;;  %s6236_s29 = sld [smem:[#allocation26_spill]] }
 0xc08   : > { %s6237_s1 = sld [smem:[#allocation25_spill]]  ;;  %s6238_s27 = smov %s5174_s28 }
 0xc09   : > { %s6240_s30 = smov %s5186_s9  ;;  %31 = sbr.rel (!%p29_p6) target bundleno = 16 (0x10), region = 176 }
 0xc0c   : > { %s6239_s28 = smov %s6235_s18 }
 0xc0e   : > { %s6241_s9 = smov %s6237_s1 }
 0xc10   :  { %3798 = vsyncpa [#allocation4], 1 }
 0xc11   :  { %3800 = vsyncpa [#allocation4 + $0x1], 1 }
 0xc12   :  { %3801 = vsyncpa [#allocation7], 1 }
 0xc13   :  { %3803 = vsyncpa [#allocation7 + $0x1], 1 }
 0xc14   :  { %3804 = vsyncpa [#allocation10], 1 }
 0xc15   :  { %3806 = vsyncpa [#allocation10 + $0x1], 1 }
 0xc16   :  { %3807 = vsyncpa [#allocation13], 1 }
 0xc17   :  { %3809 = vsyncpa [#allocation13 + $0x1], 1 }
 0xc18   :  { %3810 = vsyncpa [#allocation16], 1 }
 0xc19   :  { %3812 = vsyncpa [#allocation16 + $0x1], 1 }
 0xc1a   :  { %3813 = vsyncpa [#allocation5], 1 }
 0xc1b   :  { %3815 = vsyncpa [#allocation5 + $0x1], 1 }

</bundles_post_ra>
